<compile_context>
chip_gen: v7x
topology: tpu7x:2x2x1
jax: 0.10.0
libtpu: 0.0.40
codegen_flags: <defaults>
</compile_context>

<pallas_src>
import numpy as np
import jax
import jax.numpy as jnp
from jax.experimental import pallas as pl
from jax.experimental.pallas import tpu as pltpu

KH = 6       # conv kernel height
STRIDE = 3   # conv stride along H
PAD = 1      # conv zero-padding along H


def _conv_out_len(h):
    return (h + 2 * PAD - KH) // STRIDE + 1


def _make_encoder_kernel(heights):
    """heights = (H_in, H1, H2, H3) — all static Python ints."""
    h_ins = heights[:-1]
    h_outs = heights[1:]

    def conv_bn_relu(x, xp_ref, w_ref, b_ref, hi, ho):
        # x: (hi, Cin) f32 value, w_ref: (KH, Cin, Cout), b_ref: (1, Cout)
        c_in = x.shape[1]
        lp = xp_ref.shape[0]              # = STRIDE*ho + KH - STRIDE = 3*ho + 3
        lsel = STRIDE * (ho - 1) + 1      # dense (stride-1) conv rows needed
        keep = min(hi, lp - 1)            # rows of x any output window touches

        # ---- zero-padded input staged in a VMEM scratch (in-kernel padding) ----
        xp_ref[0:1, :] = jnp.zeros((1, c_in), jnp.float32)            # top pad
        xp_ref[1:1 + keep, :] = x[:keep, :]
        if 1 + keep < lp:                                             # bottom pad
            xp_ref[1 + keep:, :] = jnp.zeros((lp - 1 - keep, c_in), jnp.float32)

        # ---- dense stride-1 conv: one MXU dot per tap (BN scale pre-folded) ----
        z = jnp.zeros((lsel, w_ref.shape[2]), jnp.float32)
        for k in range(KH):
            z = z + jnp.dot(xp_ref[k:k + lsel, :], w_ref[k],
                            preferred_element_type=jnp.float32)

        # ---- stride-3 downsample as a 0/1 selection matmul (keeps the gather
        #      on the MXU; no strided slices / sublane reshapes needed) ----
        rows = jax.lax.broadcasted_iota(jnp.int32, (ho, lsel), 0)
        cols = jax.lax.broadcasted_iota(jnp.int32, (ho, lsel), 1)
        sel = (cols == STRIDE * rows).astype(jnp.float32)
        y = jnp.dot(sel, z, preferred_element_type=jnp.float32)

        # ---- folded BN/bias shift + ReLU ----
        return jnp.maximum(y + b_ref[...], 0.0)

    def kernel(x_ref, w1_ref, b1_ref, w2_ref, b2_ref, w3_ref, b3_ref,
               o_ref, xp1_ref, xp2_ref, xp3_ref):
        y = x_ref[0].astype(jnp.float32)                              # (H, 27)
        y = conv_bn_relu(y, xp1_ref, w1_ref, b1_ref, h_ins[0], h_outs[0])
        y = conv_bn_relu(y, xp2_ref, w2_ref, b2_ref, h_ins[1], h_outs[1])
        y = conv_bn_relu(y, xp3_ref, w3_ref, b3_ref, h_ins[2], h_outs[2])
        o_ref[0] = y.astype(o_ref.dtype)                              # (H3, 128)

    return kernel


def _replicated_spec(shape):
    nd = len(shape)
    return pl.BlockSpec(shape, lambda i, _nd=nd: (0,) * _nd)


def encoder_forward(params, x_nchw):
    """params: folded [(w (KH,Cin,Cout), shift (1,Cout)) x 3]; x: (N, 27, H, W)."""
    (w1, b1), (w2, b2), (w3, b3) = params
    n, c0, h0, wd = x_nchw.shape
    c1, c2, c3 = w1.shape[2], w2.shape[2], w3.shape[2]
    h1, h2, h3 = _conv_out_len(h0), 0, 0
    h2 = _conv_out_len(h1)
    h3 = _conv_out_len(h2)
    b = n * wd

    # channels-last, W folded into the sample axis: (N, C, H, W) -> (N*W, H, C)
    x = jnp.transpose(x_nchw, (0, 3, 2, 1)).reshape(b, h0, c0)

    out = pl.pallas_call(
        _make_encoder_kernel((h0, h1, h2, h3)),
        grid=(b,),
        in_specs=[
            pl.BlockSpec((1, h0, c0), lambda i: (i, 0, 0)),
            _replicated_spec(w1.shape), _replicated_spec(b1.shape),
            _replicated_spec(w2.shape), _replicated_spec(b2.shape),
            _replicated_spec(w3.shape), _replicated_spec(b3.shape),
        ],
        out_specs=pl.BlockSpec((1, h3, c3), lambda i: (i, 0, 0)),
        out_shape=jax.ShapeDtypeStruct((b, h3, c3), jnp.float32),
        scratch_shapes=[
            pltpu.VMEM((STRIDE * h1 + KH - STRIDE, c0), jnp.float32),
            pltpu.VMEM((STRIDE * h2 + KH - STRIDE, c1), jnp.float32),
            pltpu.VMEM((STRIDE * h3 + KH - STRIDE, c2), jnp.float32),
        ],
        compiler_params=pltpu.CompilerParams(
            dimension_semantics=("parallel",)),   # v7x: split samples over 2 TCs
    )(x, w1, b1, w2, b2, w3, b3)

    return jnp.transpose(out.reshape(n, wd, h3, c3), (0, 3, 2, 1))    # -> NCHW


def init_encoder_params(key, channels=(27, 32, 64, 128), eps=1e-5):
    """Synthetic Conv/BN params (PyTorch layout) + folded form for the kernel.

    BN folded in inference mode (running_mean=0, running_var=1):
        y = relu(scale * (conv(x) + bias) + beta),  scale = gamma / sqrt(1 + eps)
    so  w_folded = w * scale[cout],  shift = bias * scale + beta.
    """
    raw, folded = [], []
    for cin, cout in zip(channels[:-1], channels[1:]):
        key, kw, kb, kg, kbt = jax.random.split(key, 5)
        weight = jax.random.normal(kw, (cout, cin, KH, 1), jnp.float32) / np.sqrt(cin * KH)
        bias = 0.1 * jax.random.normal(kb, (cout,), jnp.float32)
        gamma = 1.0 + 0.1 * jax.random.normal(kg, (cout,), jnp.float32)
        beta = 0.1 * jax.random.normal(kbt, (cout,), jnp.float32)
        raw.append((weight, bias, gamma, beta))

        scale = gamma / jnp.sqrt(1.0 + eps)
        w_kio = jnp.transpose(weight[:, :, :, 0], (2, 1, 0))          # (KH, Cin, Cout)
        folded.append((w_kio * scale[None, None, :],
                       (bias * scale + beta).reshape(1, cout)))
    return raw, folded


# ----- plain-JAX reference (for correctness check only) -----
def encoder_reference(raw_params, x_nchw, eps=1e-5):
    x = jnp.transpose(x_nchw, (0, 2, 3, 1))                           # NHWC
    for weight, bias, gamma, beta in raw_params:
        w_hwio = jnp.transpose(weight, (2, 3, 1, 0))                  # (KH, 1, Cin, Cout)
        y = jax.lax.conv_general_dilated(
            x, w_hwio, window_strides=(STRIDE, 1),
            padding=[(PAD, PAD), (0, 0)],
            dimension_numbers=("NHWC", "HWIO", "NHWC"),
            precision=jax.lax.Precision.HIGHEST)
        scale = gamma / jnp.sqrt(1.0 + eps)                           # BN inference, mean=0/var=1
        x = jnp.maximum((y + bias) * scale + beta, 0.0)
    return jnp.transpose(x, (0, 3, 1, 2))                             # NCHW


if __name__ == "__main__":
    key = jax.random.PRNGKey(0)
    kx, kp = jax.random.split(key)
    N, C, H, W = 2, 27, 100, 1          # -> H: 100 -> 33 -> 10 -> 3
    x = jax.random.normal(kx, (N, C, H, W), jnp.float32)
    raw, folded = init_encoder_params(kp)

    out = jax.jit(encoder_forward)(folded, x)
    out = jax.block_until_ready(out)

    h = H
    for _ in range(3):
        h = _conv_out_len(h)
    assert out.shape == (N, 128, h, W), out.shape

    ref = encoder_reference(raw, x)
    # Tolerance allows for possible bf16-pass rounding of the f32 MXU dots vs.
    # the HIGHEST-precision XLA conv reference; structural errors would be O(1).
    np.testing.assert_allclose(np.asarray(out), np.asarray(ref), rtol=2e-2, atol=2e-2)
    print("KERNEL_OK")
</pallas_src>

<mosaic_0001>
module attributes {stable_mosaic.version = 11 : i64} {
  func.func @kernel(%arg0: i32, %arg1: memref<1x100x27xf32, #tpu.memory_space<vmem>>, %arg2: memref<6x27x32xf32, #tpu.memory_space<vmem>>, %arg3: memref<1x32xf32, #tpu.memory_space<vmem>>, %arg4: memref<6x32x64xf32, #tpu.memory_space<vmem>>, %arg5: memref<1x64xf32, #tpu.memory_space<vmem>>, %arg6: memref<6x64x128xf32, #tpu.memory_space<vmem>>, %arg7: memref<1x128xf32, #tpu.memory_space<vmem>>, %arg8: memref<1x3x128xf32, #tpu.memory_space<vmem>>, %arg9: memref<102x27xf32, #tpu.memory_space<vmem>>, %arg10: memref<33x32xf32, #tpu.memory_space<vmem>>, %arg11: memref<12x64xf32, #tpu.memory_space<vmem>>) attributes {dimension_semantics = [#tpu.dimension_semantics<parallel>], iteration_bounds = array<i64: 2>, scalar_prefetch = 0 : i64, scratch_operands = 3 : i64, tpu.core_type = #tpu.core_type<tc>, window_params = [{transform_indices = @transform_0, window_bounds = array<i64: 1, 100, 27>}, {pipeline_mode = #tpu.pipeline_mode<synchronous>, transform_indices = @transform_1, window_bounds = array<i64: 6, 27, 32>}, {pipeline_mode = #tpu.pipeline_mode<synchronous>, transform_indices = @transform_2, window_bounds = array<i64: 1, 32>}, {pipeline_mode = #tpu.pipeline_mode<synchronous>, transform_indices = @transform_3, window_bounds = array<i64: 6, 32, 64>}, {pipeline_mode = #tpu.pipeline_mode<synchronous>, transform_indices = @transform_4, window_bounds = array<i64: 1, 64>}, {pipeline_mode = #tpu.pipeline_mode<synchronous>, transform_indices = @transform_5, window_bounds = array<i64: 6, 64, 128>}, {pipeline_mode = #tpu.pipeline_mode<synchronous>, transform_indices = @transform_6, window_bounds = array<i64: 1, 128>}, {transform_indices = @transform_7, window_bounds = array<i64: 1, 3, 128>}]} {
    %c0 = arith.constant 0 : index
    %c0_0 = arith.constant 0 : index
    %c0_1 = arith.constant 0 : index
    %0 = vector.load %arg1[%c0, %c0_0, %c0_1] : memref<1x100x27xf32, #tpu.memory_space<vmem>>, vector<1x100x27xf32>
    %1 = vector.shape_cast %0 : vector<1x100x27xf32> to vector<100x27xf32>
    %cst = arith.constant 0.000000e+00 : f32
    %2 = vector.broadcast %cst : f32 to vector<1x27xf32>
    %c0_2 = arith.constant 0 : index
    %c0_3 = arith.constant 0 : index
    %3 = vector.load %arg9[%c0_2, %c0_3] : memref<102x27xf32, #tpu.memory_space<vmem>>, vector<1x27xf32>
    tpu.vector_store %arg9[%c0_2, %c0_3], %2 {strides = array<i32>} : memref<102x27xf32, #tpu.memory_space<vmem>>, vector<1x27xf32>,
    %c1 = arith.constant 1 : index
    %c0_4 = arith.constant 0 : index
    %4 = vector.load %arg9[%c1, %c0_4] : memref<102x27xf32, #tpu.memory_space<vmem>>, vector<100x27xf32>
    tpu.vector_store %arg9[%c1, %c0_4], %1 {strides = array<i32>} : memref<102x27xf32, #tpu.memory_space<vmem>>, vector<100x27xf32>,
    %cst_5 = arith.constant 0.000000e+00 : f32
    %5 = vector.broadcast %cst_5 : f32 to vector<1x27xf32>
    %c101 = arith.constant 101 : index
    %c0_6 = arith.constant 0 : index
    %6 = vector.load %arg9[%c101, %c0_6] : memref<102x27xf32, #tpu.memory_space<vmem>>, vector<1x27xf32>
    tpu.vector_store %arg9[%c101, %c0_6], %5 {strides = array<i32>} : memref<102x27xf32, #tpu.memory_space<vmem>>, vector<1x27xf32>,
    %cst_7 = arith.constant 0.000000e+00 : f32
    %7 = vector.broadcast %cst_7 : f32 to vector<97x32xf32>
    %c0_8 = arith.constant 0 : index
    %c0_9 = arith.constant 0 : index
    %8 = vector.load %arg9[%c0_8, %c0_9] : memref<102x27xf32, #tpu.memory_space<vmem>>, vector<97x27xf32>
    %c0_10 = arith.constant 0 : index
    %c0_11 = arith.constant 0 : index
    %c0_12 = arith.constant 0 : index
    %9 = vector.load %arg2[%c0_10, %c0_11, %c0_12] : memref<6x27x32xf32, #tpu.memory_space<vmem>>, vector<1x27x32xf32>
    %10 = vector.shape_cast %9 : vector<1x27x32xf32> to vector<27x32xf32>
    %cst_13 = arith.constant dense<0.000000e+00> : vector<97x32xf32>
    %11 = tpu.matmul %8, %10, %cst_13 {dimension_numbers = #tpu.dot_dimension_numbers<[1], [0], [0], [1], [0, 0, 1, 1], [], []>} : vector<97x27xf32>, vector<27x32xf32>, vector<97x32xf32> -> vector<97x32xf32>
    %12 = arith.addf %7, %11 : vector<97x32xf32>
    %c1_14 = arith.constant 1 : index
    %c0_15 = arith.constant 0 : index
    %13 = vector.load %arg9[%c1_14, %c0_15] : memref<102x27xf32, #tpu.memory_space<vmem>>, vector<97x27xf32>
    %c1_16 = arith.constant 1 : index
    %c0_17 = arith.constant 0 : index
    %c0_18 = arith.constant 0 : index
    %14 = vector.load %arg2[%c1_16, %c0_17, %c0_18] : memref<6x27x32xf32, #tpu.memory_space<vmem>>, vector<1x27x32xf32>
    %15 = vector.shape_cast %14 : vector<1x27x32xf32> to vector<27x32xf32>
    %cst_19 = arith.constant dense<0.000000e+00> : vector<97x32xf32>
    %16 = tpu.matmul %13, %15, %cst_19 {dimension_numbers = #tpu.dot_dimension_numbers<[1], [0], [0], [1], [0, 0, 1, 1], [], []>} : vector<97x27xf32>, vector<27x32xf32>, vector<97x32xf32> -> vector<97x32xf32>
    %17 = arith.addf %12, %16 : vector<97x32xf32>
    %c2 = arith.constant 2 : index
    %c0_20 = arith.constant 0 : index
    %18 = vector.load %arg9[%c2, %c0_20] : memref<102x27xf32, #tpu.memory_space<vmem>>, vector<97x27xf32>
    %c2_21 = arith.constant 2 : index
    %c0_22 = arith.constant 0 : index
    %c0_23 = arith.constant 0 : index
    %19 = vector.load %arg2[%c2_21, %c0_22, %c0_23] : memref<6x27x32xf32, #tpu.memory_space<vmem>>, vector<1x27x32xf32>
    %20 = vector.shape_cast %19 : vector<1x27x32xf32> to vector<27x32xf32>
    %cst_24 = arith.constant dense<0.000000e+00> : vector<97x32xf32>
    %21 = tpu.matmul %18, %20, %cst_24 {dimension_numbers = #tpu.dot_dimension_numbers<[1], [0], [0], [1], [0, 0, 1, 1], [], []>} : vector<97x27xf32>, vector<27x32xf32>, vector<97x32xf32> -> vector<97x32xf32>
    %22 = arith.addf %17, %21 : vector<97x32xf32>
    %c3 = arith.constant 3 : index
    %c0_25 = arith.constant 0 : index
    %23 = vector.load %arg9[%c3, %c0_25] : memref<102x27xf32, #tpu.memory_space<vmem>>, vector<97x27xf32>
    %c3_26 = arith.constant 3 : index
    %c0_27 = arith.constant 0 : index
    %c0_28 = arith.constant 0 : index
    %24 = vector.load %arg2[%c3_26, %c0_27, %c0_28] : memref<6x27x32xf32, #tpu.memory_space<vmem>>, vector<1x27x32xf32>
    %25 = vector.shape_cast %24 : vector<1x27x32xf32> to vector<27x32xf32>
    %cst_29 = arith.constant dense<0.000000e+00> : vector<97x32xf32>
    %26 = tpu.matmul %23, %25, %cst_29 {dimension_numbers = #tpu.dot_dimension_numbers<[1], [0], [0], [1], [0, 0, 1, 1], [], []>} : vector<97x27xf32>, vector<27x32xf32>, vector<97x32xf32> -> vector<97x32xf32>
    %27 = arith.addf %22, %26 : vector<97x32xf32>
    %c4 = arith.constant 4 : index
    %c0_30 = arith.constant 0 : index
    %28 = vector.load %arg9[%c4, %c0_30] : memref<102x27xf32, #tpu.memory_space<vmem>>, vector<97x27xf32>
    %c4_31 = arith.constant 4 : index
    %c0_32 = arith.constant 0 : index
    %c0_33 = arith.constant 0 : index
    %29 = vector.load %arg2[%c4_31, %c0_32, %c0_33] : memref<6x27x32xf32, #tpu.memory_space<vmem>>, vector<1x27x32xf32>
    %30 = vector.shape_cast %29 : vector<1x27x32xf32> to vector<27x32xf32>
    %cst_34 = arith.constant dense<0.000000e+00> : vector<97x32xf32>
    %31 = tpu.matmul %28, %30, %cst_34 {dimension_numbers = #tpu.dot_dimension_numbers<[1], [0], [0], [1], [0, 0, 1, 1], [], []>} : vector<97x27xf32>, vector<27x32xf32>, vector<97x32xf32> -> vector<97x32xf32>
    %32 = arith.addf %27, %31 : vector<97x32xf32>
    %c5 = arith.constant 5 : index
    %c0_35 = arith.constant 0 : index
    %33 = vector.load %arg9[%c5, %c0_35] : memref<102x27xf32, #tpu.memory_space<vmem>>, vector<97x27xf32>
    %c5_36 = arith.constant 5 : index
    %c0_37 = arith.constant 0 : index
    %c0_38 = arith.constant 0 : index
    %34 = vector.load %arg2[%c5_36, %c0_37, %c0_38] : memref<6x27x32xf32, #tpu.memory_space<vmem>>, vector<1x27x32xf32>
    %35 = vector.shape_cast %34 : vector<1x27x32xf32> to vector<27x32xf32>
    %cst_39 = arith.constant dense<0.000000e+00> : vector<97x32xf32>
    %36 = tpu.matmul %33, %35, %cst_39 {dimension_numbers = #tpu.dot_dimension_numbers<[1], [0], [0], [1], [0, 0, 1, 1], [], []>} : vector<97x27xf32>, vector<27x32xf32>, vector<97x32xf32> -> vector<97x32xf32>
    %37 = arith.addf %32, %36 : vector<97x32xf32>
    %38 = tpu.iota {dimensions = array<i32: 0>} : vector<33x97xi32>
    %39 = tpu.iota {dimensions = array<i32: 1>} : vector<33x97xi32>
    %c3_i32 = arith.constant 3 : i32
    %40 = vector.broadcast %c3_i32 : i32 to vector<33x97xi32>
    %41 = arith.muli %40, %38 : vector<33x97xi32>
    %42 = arith.cmpi eq, %39, %41 : vector<33x97xi32>
    %43 = arith.extui %42 : vector<33x97xi1> to vector<33x97xi32>
    %44 = arith.sitofp %43 : vector<33x97xi32> to vector<33x97xf32>
    %cst_40 = arith.constant dense<0.000000e+00> : vector<33x32xf32>
    %45 = tpu.matmul %44, %37, %cst_40 {dimension_numbers = #tpu.dot_dimension_numbers<[1], [0], [0], [1], [0, 0, 1, 1], [], []>} : vector<33x97xf32>, vector<97x32xf32>, vector<33x32xf32> -> vector<33x32xf32>
    %c0_41 = arith.constant 0 : index
    %c0_42 = arith.constant 0 : index
    %46 = vector.load %arg3[%c0_41, %c0_42] : memref<1x32xf32, #tpu.memory_space<vmem>>, vector<1x32xf32>
    %47 = vector.broadcast %46 : vector<1x32xf32> to vector<33x32xf32>
    %48 = arith.addf %45, %47 : vector<33x32xf32>
    %cst_43 = arith.constant 0.000000e+00 : f32
    %49 = vector.broadcast %cst_43 : f32 to vector<33x32xf32>
    %50 = arith.maximumf %48, %49 : vector<33x32xf32>
    %cst_44 = arith.constant 0.000000e+00 : f32
    %51 = vector.broadcast %cst_44 : f32 to vector<1x32xf32>
    %c0_45 = arith.constant 0 : index
    %c0_46 = arith.constant 0 : index
    %52 = vector.load %arg10[%c0_45, %c0_46] : memref<33x32xf32, #tpu.memory_space<vmem>>, vector<1x32xf32>
    tpu.vector_store %arg10[%c0_45, %c0_46], %51 {strides = array<i32>} : memref<33x32xf32, #tpu.memory_space<vmem>>, vector<1x32xf32>,
    %53 = vector.extract_strided_slice %50 {offsets = [0, 0], sizes = [32, 32], strides = [1, 1]} : vector<33x32xf32> to vector<32x32xf32>
    %c1_47 = arith.constant 1 : index
    %c0_48 = arith.constant 0 : index
    %54 = vector.load %arg10[%c1_47, %c0_48] : memref<33x32xf32, #tpu.memory_space<vmem>>, vector<32x32xf32>
    tpu.vector_store %arg10[%c1_47, %c0_48], %53 {strides = array<i32>} : memref<33x32xf32, #tpu.memory_space<vmem>>, vector<32x32xf32>,
    %cst_49 = arith.constant 0.000000e+00 : f32
    %55 = vector.broadcast %cst_49 : f32 to vector<28x64xf32>
    %c0_50 = arith.constant 0 : index
    %c0_51 = arith.constant 0 : index
    %56 = vector.load %arg10[%c0_50, %c0_51] : memref<33x32xf32, #tpu.memory_space<vmem>>, vector<28x32xf32>
    %c0_52 = arith.constant 0 : index
    %c0_53 = arith.constant 0 : index
    %c0_54 = arith.constant 0 : index
    %57 = vector.load %arg4[%c0_52, %c0_53, %c0_54] : memref<6x32x64xf32, #tpu.memory_space<vmem>>, vector<1x32x64xf32>
    %58 = vector.shape_cast %57 : vector<1x32x64xf32> to vector<32x64xf32>
    %cst_55 = arith.constant dense<0.000000e+00> : vector<28x64xf32>
    %59 = tpu.matmul %56, %58, %cst_55 {dimension_numbers = #tpu.dot_dimension_numbers<[1], [0], [0], [1], [0, 0, 1, 1], [], []>} : vector<28x32xf32>, vector<32x64xf32>, vector<28x64xf32> -> vector<28x64xf32>
    %60 = arith.addf %55, %59 : vector<28x64xf32>
    %c1_56 = arith.constant 1 : index
    %c0_57 = arith.constant 0 : index
    %61 = vector.load %arg10[%c1_56, %c0_57] : memref<33x32xf32, #tpu.memory_space<vmem>>, vector<28x32xf32>
    %c1_58 = arith.constant 1 : index
    %c0_59 = arith.constant 0 : index
    %c0_60 = arith.constant 0 : index
    %62 = vector.load %arg4[%c1_58, %c0_59, %c0_60] : memref<6x32x64xf32, #tpu.memory_space<vmem>>, vector<1x32x64xf32>
    %63 = vector.shape_cast %62 : vector<1x32x64xf32> to vector<32x64xf32>
    %cst_61 = arith.constant dense<0.000000e+00> : vector<28x64xf32>
    %64 = tpu.matmul %61, %63, %cst_61 {dimension_numbers = #tpu.dot_dimension_numbers<[1], [0], [0], [1], [0, 0, 1, 1], [], []>} : vector<28x32xf32>, vector<32x64xf32>, vector<28x64xf32> -> vector<28x64xf32>
    %65 = arith.addf %60, %64 : vector<28x64xf32>
    %c2_62 = arith.constant 2 : index
    %c0_63 = arith.constant 0 : index
    %66 = vector.load %arg10[%c2_62, %c0_63] : memref<33x32xf32, #tpu.memory_space<vmem>>, vector<28x32xf32>
    %c2_64 = arith.constant 2 : index
    %c0_65 = arith.constant 0 : index
    %c0_66 = arith.constant 0 : index
    %67 = vector.load %arg4[%c2_64, %c0_65, %c0_66] : memref<6x32x64xf32, #tpu.memory_space<vmem>>, vector<1x32x64xf32>
    %68 = vector.shape_cast %67 : vector<1x32x64xf32> to vector<32x64xf32>
    %cst_67 = arith.constant dense<0.000000e+00> : vector<28x64xf32>
    %69 = tpu.matmul %66, %68, %cst_67 {dimension_numbers = #tpu.dot_dimension_numbers<[1], [0], [0], [1], [0, 0, 1, 1], [], []>} : vector<28x32xf32>, vector<32x64xf32>, vector<28x64xf32> -> vector<28x64xf32>
    %70 = arith.addf %65, %69 : vector<28x64xf32>
    %c3_68 = arith.constant 3 : index
    %c0_69 = arith.constant 0 : index
    %71 = vector.load %arg10[%c3_68, %c0_69] : memref<33x32xf32, #tpu.memory_space<vmem>>, vector<28x32xf32>
    %c3_70 = arith.constant 3 : index
    %c0_71 = arith.constant 0 : index
    %c0_72 = arith.constant 0 : index
    %72 = vector.load %arg4[%c3_70, %c0_71, %c0_72] : memref<6x32x64xf32, #tpu.memory_space<vmem>>, vector<1x32x64xf32>
    %73 = vector.shape_cast %72 : vector<1x32x64xf32> to vector<32x64xf32>
    %cst_73 = arith.constant dense<0.000000e+00> : vector<28x64xf32>
    %74 = tpu.matmul %71, %73, %cst_73 {dimension_numbers = #tpu.dot_dimension_numbers<[1], [0], [0], [1], [0, 0, 1, 1], [], []>} : vector<28x32xf32>, vector<32x64xf32>, vector<28x64xf32> -> vector<28x64xf32>
    %75 = arith.addf %70, %74 : vector<28x64xf32>
    %c4_74 = arith.constant 4 : index
    %c0_75 = arith.constant 0 : index
    %76 = vector.load %arg10[%c4_74, %c0_75] : memref<33x32xf32, #tpu.memory_space<vmem>>, vector<28x32xf32>
    %c4_76 = arith.constant 4 : index
    %c0_77 = arith.constant 0 : index
    %c0_78 = arith.constant 0 : index
    %77 = vector.load %arg4[%c4_76, %c0_77, %c0_78] : memref<6x32x64xf32, #tpu.memory_space<vmem>>, vector<1x32x64xf32>
    %78 = vector.shape_cast %77 : vector<1x32x64xf32> to vector<32x64xf32>
    %cst_79 = arith.constant dense<0.000000e+00> : vector<28x64xf32>
    %79 = tpu.matmul %76, %78, %cst_79 {dimension_numbers = #tpu.dot_dimension_numbers<[1], [0], [0], [1], [0, 0, 1, 1], [], []>} : vector<28x32xf32>, vector<32x64xf32>, vector<28x64xf32> -> vector<28x64xf32>
    %80 = arith.addf %75, %79 : vector<28x64xf32>
    %c5_80 = arith.constant 5 : index
    %c0_81 = arith.constant 0 : index
    %81 = vector.load %arg10[%c5_80, %c0_81] : memref<33x32xf32, #tpu.memory_space<vmem>>, vector<28x32xf32>
    %c5_82 = arith.constant 5 : index
    %c0_83 = arith.constant 0 : index
    %c0_84 = arith.constant 0 : index
    %82 = vector.load %arg4[%c5_82, %c0_83, %c0_84] : memref<6x32x64xf32, #tpu.memory_space<vmem>>, vector<1x32x64xf32>
    %83 = vector.shape_cast %82 : vector<1x32x64xf32> to vector<32x64xf32>
    %cst_85 = arith.constant dense<0.000000e+00> : vector<28x64xf32>
    %84 = tpu.matmul %81, %83, %cst_85 {dimension_numbers = #tpu.dot_dimension_numbers<[1], [0], [0], [1], [0, 0, 1, 1], [], []>} : vector<28x32xf32>, vector<32x64xf32>, vector<28x64xf32> -> vector<28x64xf32>
    %85 = arith.addf %80, %84 : vector<28x64xf32>
    %86 = tpu.iota {dimensions = array<i32: 0>} : vector<10x28xi32>
    %87 = tpu.iota {dimensions = array<i32: 1>} : vector<10x28xi32>
    %c3_i32_86 = arith.constant 3 : i32
    %88 = vector.broadcast %c3_i32_86 : i32 to vector<10x28xi32>
    %89 = arith.muli %88, %86 : vector<10x28xi32>
    %90 = arith.cmpi eq, %87, %89 : vector<10x28xi32>
    %91 = arith.extui %90 : vector<10x28xi1> to vector<10x28xi32>
    %92 = arith.sitofp %91 : vector<10x28xi32> to vector<10x28xf32>
    %cst_87 = arith.constant dense<0.000000e+00> : vector<10x64xf32>
    %93 = tpu.matmul %92, %85, %cst_87 {dimension_numbers = #tpu.dot_dimension_numbers<[1], [0], [0], [1], [0, 0, 1, 1], [], []>} : vector<10x28xf32>, vector<28x64xf32>, vector<10x64xf32> -> vector<10x64xf32>
    %c0_88 = arith.constant 0 : index
    %c0_89 = arith.constant 0 : index
    %94 = vector.load %arg5[%c0_88, %c0_89] : memref<1x64xf32, #tpu.memory_space<vmem>>, vector<1x64xf32>
    %95 = vector.broadcast %94 : vector<1x64xf32> to vector<10x64xf32>
    %96 = arith.addf %93, %95 : vector<10x64xf32>
    %cst_90 = arith.constant 0.000000e+00 : f32
    %97 = vector.broadcast %cst_90 : f32 to vector<10x64xf32>
    %98 = arith.maximumf %96, %97 : vector<10x64xf32>
    %cst_91 = arith.constant 0.000000e+00 : f32
    %99 = vector.broadcast %cst_91 : f32 to vector<1x64xf32>
    %c0_92 = arith.constant 0 : index
    %c0_93 = arith.constant 0 : index
    %100 = vector.load %arg11[%c0_92, %c0_93] : memref<12x64xf32, #tpu.memory_space<vmem>>, vector<1x64xf32>
    tpu.vector_store %arg11[%c0_92, %c0_93], %99 {strides = array<i32>} : memref<12x64xf32, #tpu.memory_space<vmem>>, vector<1x64xf32>,
    %c1_94 = arith.constant 1 : index
    %c0_95 = arith.constant 0 : index
    %101 = vector.load %arg11[%c1_94, %c0_95] : memref<12x64xf32, #tpu.memory_space<vmem>>, vector<10x64xf32>
    tpu.vector_store %arg11[%c1_94, %c0_95], %98 {strides = array<i32>} : memref<12x64xf32, #tpu.memory_space<vmem>>, vector<10x64xf32>,
    %cst_96 = arith.constant 0.000000e+00 : f32
    %102 = vector.broadcast %cst_96 : f32 to vector<1x64xf32>
    %c11 = arith.constant 11 : index
    %c0_97 = arith.constant 0 : index
    %103 = vector.load %arg11[%c11, %c0_97] : memref<12x64xf32, #tpu.memory_space<vmem>>, vector<1x64xf32>
    tpu.vector_store %arg11[%c11, %c0_97], %102 {strides = array<i32>} : memref<12x64xf32, #tpu.memory_space<vmem>>, vector<1x64xf32>,
    %cst_98 = arith.constant 0.000000e+00 : f32
    %104 = vector.broadcast %cst_98 : f32 to vector<7x128xf32>
    %c0_99 = arith.constant 0 : index
    %c0_100 = arith.constant 0 : index
    %105 = vector.load %arg11[%c0_99, %c0_100] : memref<12x64xf32, #tpu.memory_space<vmem>>, vector<7x64xf32>
    %c0_101 = arith.constant 0 : index
    %c0_102 = arith.constant 0 : index
    %c0_103 = arith.constant 0 : index
    %106 = vector.load %arg6[%c0_101, %c0_102, %c0_103] : memref<6x64x128xf32, #tpu.memory_space<vmem>>, vector<1x64x128xf32>
    %107 = vector.shape_cast %106 : vector<1x64x128xf32> to vector<64x128xf32>
    %cst_104 = arith.constant dense<0.000000e+00> : vector<7x128xf32>
    %108 = tpu.matmul %105, %107, %cst_104 {dimension_numbers = #tpu.dot_dimension_numbers<[1], [0], [0], [1], [0, 0, 1, 1], [], []>} : vector<7x64xf32>, vector<64x128xf32>, vector<7x128xf32> -> vector<7x128xf32>
    %109 = arith.addf %104, %108 : vector<7x128xf32>
    %c1_105 = arith.constant 1 : index
    %c0_106 = arith.constant 0 : index
    %110 = vector.load %arg11[%c1_105, %c0_106] : memref<12x64xf32, #tpu.memory_space<vmem>>, vector<7x64xf32>
    %c1_107 = arith.constant 1 : index
    %c0_108 = arith.constant 0 : index
    %c0_109 = arith.constant 0 : index
    %111 = vector.load %arg6[%c1_107, %c0_108, %c0_109] : memref<6x64x128xf32, #tpu.memory_space<vmem>>, vector<1x64x128xf32>
    %112 = vector.shape_cast %111 : vector<1x64x128xf32> to vector<64x128xf32>
    %cst_110 = arith.constant dense<0.000000e+00> : vector<7x128xf32>
    %113 = tpu.matmul %110, %112, %cst_110 {dimension_numbers = #tpu.dot_dimension_numbers<[1], [0], [0], [1], [0, 0, 1, 1], [], []>} : vector<7x64xf32>, vector<64x128xf32>, vector<7x128xf32> -> vector<7x128xf32>
    %114 = arith.addf %109, %113 : vector<7x128xf32>
    %c2_111 = arith.constant 2 : index
    %c0_112 = arith.constant 0 : index
    %115 = vector.load %arg11[%c2_111, %c0_112] : memref<12x64xf32, #tpu.memory_space<vmem>>, vector<7x64xf32>
    %c2_113 = arith.constant 2 : index
    %c0_114 = arith.constant 0 : index
    %c0_115 = arith.constant 0 : index
    %116 = vector.load %arg6[%c2_113, %c0_114, %c0_115] : memref<6x64x128xf32, #tpu.memory_space<vmem>>, vector<1x64x128xf32>
    %117 = vector.shape_cast %116 : vector<1x64x128xf32> to vector<64x128xf32>
    %cst_116 = arith.constant dense<0.000000e+00> : vector<7x128xf32>
    %118 = tpu.matmul %115, %117, %cst_116 {dimension_numbers = #tpu.dot_dimension_numbers<[1], [0], [0], [1], [0, 0, 1, 1], [], []>} : vector<7x64xf32>, vector<64x128xf32>, vector<7x128xf32> -> vector<7x128xf32>
    %119 = arith.addf %114, %118 : vector<7x128xf32>
    %c3_117 = arith.constant 3 : index
    %c0_118 = arith.constant 0 : index
    %120 = vector.load %arg11[%c3_117, %c0_118] : memref<12x64xf32, #tpu.memory_space<vmem>>, vector<7x64xf32>
    %c3_119 = arith.constant 3 : index
    %c0_120 = arith.constant 0 : index
    %c0_121 = arith.constant 0 : index
    %121 = vector.load %arg6[%c3_119, %c0_120, %c0_121] : memref<6x64x128xf32, #tpu.memory_space<vmem>>, vector<1x64x128xf32>
    %122 = vector.shape_cast %121 : vector<1x64x128xf32> to vector<64x128xf32>
    %cst_122 = arith.constant dense<0.000000e+00> : vector<7x128xf32>
    %123 = tpu.matmul %120, %122, %cst_122 {dimension_numbers = #tpu.dot_dimension_numbers<[1], [0], [0], [1], [0, 0, 1, 1], [], []>} : vector<7x64xf32>, vector<64x128xf32>, vector<7x128xf32> -> vector<7x128xf32>
    %124 = arith.addf %119, %123 : vector<7x128xf32>
    %c4_123 = arith.constant 4 : index
    %c0_124 = arith.constant 0 : index
    %125 = vector.load %arg11[%c4_123, %c0_124] : memref<12x64xf32, #tpu.memory_space<vmem>>, vector<7x64xf32>
    %c4_125 = arith.constant 4 : index
    %c0_126 = arith.constant 0 : index
    %c0_127 = arith.constant 0 : index
    %126 = vector.load %arg6[%c4_125, %c0_126, %c0_127] : memref<6x64x128xf32, #tpu.memory_space<vmem>>, vector<1x64x128xf32>
    %127 = vector.shape_cast %126 : vector<1x64x128xf32> to vector<64x128xf32>
    %cst_128 = arith.constant dense<0.000000e+00> : vector<7x128xf32>
    %128 = tpu.matmul %125, %127, %cst_128 {dimension_numbers = #tpu.dot_dimension_numbers<[1], [0], [0], [1], [0, 0, 1, 1], [], []>} : vector<7x64xf32>, vector<64x128xf32>, vector<7x128xf32> -> vector<7x128xf32>
    %129 = arith.addf %124, %128 : vector<7x128xf32>
    %c5_129 = arith.constant 5 : index
    %c0_130 = arith.constant 0 : index
    %130 = vector.load %arg11[%c5_129, %c0_130] : memref<12x64xf32, #tpu.memory_space<vmem>>, vector<7x64xf32>
    %c5_131 = arith.constant 5 : index
    %c0_132 = arith.constant 0 : index
    %c0_133 = arith.constant 0 : index
    %131 = vector.load %arg6[%c5_131, %c0_132, %c0_133] : memref<6x64x128xf32, #tpu.memory_space<vmem>>, vector<1x64x128xf32>
    %132 = vector.shape_cast %131 : vector<1x64x128xf32> to vector<64x128xf32>
    %cst_134 = arith.constant dense<0.000000e+00> : vector<7x128xf32>
    %133 = tpu.matmul %130, %132, %cst_134 {dimension_numbers = #tpu.dot_dimension_numbers<[1], [0], [0], [1], [0, 0, 1, 1], [], []>} : vector<7x64xf32>, vector<64x128xf32>, vector<7x128xf32> -> vector<7x128xf32>
    %134 = arith.addf %129, %133 : vector<7x128xf32>
    %135 = tpu.iota {dimensions = array<i32: 0>} : vector<3x7xi32>
    %136 = tpu.iota {dimensions = array<i32: 1>} : vector<3x7xi32>
    %c3_i32_135 = arith.constant 3 : i32
    %137 = vector.broadcast %c3_i32_135 : i32 to vector<3x7xi32>
    %138 = arith.muli %137, %135 : vector<3x7xi32>
    %139 = arith.cmpi eq, %136, %138 : vector<3x7xi32>
    %140 = arith.extui %139 : vector<3x7xi1> to vector<3x7xi32>
    %141 = arith.sitofp %140 : vector<3x7xi32> to vector<3x7xf32>
    %cst_136 = arith.constant dense<0.000000e+00> : vector<3x128xf32>
    %142 = tpu.matmul %141, %134, %cst_136 {dimension_numbers = #tpu.dot_dimension_numbers<[1], [0], [0], [1], [0, 0, 1, 1], [], []>} : vector<3x7xf32>, vector<7x128xf32>, vector<3x128xf32> -> vector<3x128xf32>
    %c0_137 = arith.constant 0 : index
    %c0_138 = arith.constant 0 : index
    %143 = vector.load %arg7[%c0_137, %c0_138] : memref<1x128xf32, #tpu.memory_space<vmem>>, vector<1x128xf32>
    %144 = vector.broadcast %143 : vector<1x128xf32> to vector<3x128xf32>
    %145 = arith.addf %142, %144 : vector<3x128xf32>
    %cst_139 = arith.constant 0.000000e+00 : f32
    %146 = vector.broadcast %cst_139 : f32 to vector<3x128xf32>
    %147 = arith.maximumf %145, %146 : vector<3x128xf32>
    %c0_140 = arith.constant 0 : index
    %c0_141 = arith.constant 0 : index
    %c0_142 = arith.constant 0 : index
    %148 = vector.load %arg8[%c0_140, %c0_141, %c0_142] : memref<1x3x128xf32, #tpu.memory_space<vmem>>, vector<1x3x128xf32>
    %149 = vector.shape_cast %148 : vector<1x3x128xf32> to vector<3x128xf32>
    %150 = vector.shape_cast %147 : vector<3x128xf32> to vector<1x3x128xf32>
    tpu.vector_store %arg8[%c0_140, %c0_141, %c0_142], %150 {strides = array<i32>} : memref<1x3x128xf32, #tpu.memory_space<vmem>>, vector<1x3x128xf32>,
    return
  }
  func.func @transform_0(%arg0: i32) -> (i32, i32, i32) {
    %c0_i32 = arith.constant 0 : i32
    %c0_i32_0 = arith.constant 0 : i32
    %c0_i32_1 = arith.constant 0 : i32
    return %arg0, %c0_i32, %c0_i32_0 : i32, i32, i32
  }
  func.func @transform_1(%arg0: i32) -> (i32, i32, i32) {
    %c0_i32 = arith.constant 0 : i32
    %c0_i32_0 = arith.constant 0 : i32
    %c0_i32_1 = arith.constant 0 : i32
    %c0_i32_2 = arith.constant 0 : i32
    return %c0_i32, %c0_i32_0, %c0_i32_1 : i32, i32, i32
  }
  func.func @transform_2(%arg0: i32) -> (i32, i32) {
    %c0_i32 = arith.constant 0 : i32
    %c0_i32_0 = arith.constant 0 : i32
    %c0_i32_1 = arith.constant 0 : i32
    return %c0_i32, %c0_i32_0 : i32, i32
  }
  func.func @transform_3(%arg0: i32) -> (i32, i32, i32) {
    %c0_i32 = arith.constant 0 : i32
    %c0_i32_0 = arith.constant 0 : i32
    %c0_i32_1 = arith.constant 0 : i32
    %c0_i32_2 = arith.constant 0 : i32
    return %c0_i32, %c0_i32_0, %c0_i32_1 : i32, i32, i32
  }
  func.func @transform_4(%arg0: i32) -> (i32, i32) {
    %c0_i32 = arith.constant 0 : i32
    %c0_i32_0 = arith.constant 0 : i32
    %c0_i32_1 = arith.constant 0 : i32
    return %c0_i32, %c0_i32_0 : i32, i32
  }
  func.func @transform_5(%arg0: i32) -> (i32, i32, i32) {
    %c0_i32 = arith.constant 0 : i32
    %c0_i32_0 = arith.constant 0 : i32
    %c0_i32_1 = arith.constant 0 : i32
    %c0_i32_2 = arith.constant 0 : i32
    return %c0_i32, %c0_i32_0, %c0_i32_1 : i32, i32, i32
  }
  func.func @transform_6(%arg0: i32) -> (i32, i32) {
    %c0_i32 = arith.constant 0 : i32
    %c0_i32_0 = arith.constant 0 : i32
    %c0_i32_1 = arith.constant 0 : i32
    return %c0_i32, %c0_i32_0 : i32, i32
  }
  func.func @transform_7(%arg0: i32) -> (i32, i32, i32) {
    %c0_i32 = arith.constant 0 : i32
    %c0_i32_0 = arith.constant 0 : i32
    %c0_i32_1 = arith.constant 0 : i32
    return %arg0, %c0_i32, %c0_i32_0 : i32, i32, i32
  }
}

</mosaic_0001>

<bundles_post_ra>
// kernel: encoder_forward.1
= control target key start
LH: loop header
LB: loop body
LE: loop exit
PB: predicated region body
PF: predicated region fallthrough
CT: control target
= control target key end

     0   :  { %12 = vsyncpa [#allocation6], 0  ;;  %s5113_s0 = inlined_call_operand.vmem [shape: f32[2,100,27], index: 0, kind: input, shape index: {}]   ;;  %s5114_s1 = inlined_call_operand.vmem [shape: f32[6,27,32], index: 1, kind: input, shape index: {}]   ;;  %s5115_s2 = inlined_call_operand.vmem [shape: f32[1,32], index: 2, kind: input, shape index: {}]   ;;  %s5116_s3 = inlined_call_operand.hbm [shape: f32[6,32,64], index: 3, kind: input, shape index: {}]   ;;  %s5117_s4 = inlined_call_operand.vmem [shape: f32[1,64], index: 4, kind: input, shape index: {}]   ;;  %s5118_s5 = inlined_call_operand.hbm [shape: f32[6,64,128], index: 5, kind: input, shape index: {}]   ;;  %s5119_s6 = inlined_call_operand.vmem [shape: f32[1,128], index: 6, kind: input, shape index: {}]   ;;  %s5120_s7 = inlined_call_operand.vmem [shape: f32[2,3,128], index: 7, kind: output, shape index: {}]  }
   0x1   :  { %13 = vsyncpa [#allocation8], 0  ;;  %s4524_s24 = smov 0  }
   0x2 LB: > { %s4530_s25 = sadd.s32 4294967295, %s4474_s24   ;;  %p3100_p0 = scmp.ge.s32.totalorder %s4474_s24, 1  ;;  %s4474_s24 = sphi %s4524_s24, %s19_s24  }
   0x3   : > { %p202_p1 = scmp.lt.s32.totalorder %s4474_s24, 3  ;;  %s4476_s26 = smov [#allocation5]  }
   0x4   : > { %s220_s27 = sshll.u32 %s4476_s26, 4  ;;  %p5121_p3 = scmp.eq.s32.totalorder %s4530_s25, 0  ;;  %s221_s27 = int_to_ptr.vmem [resolvable:$true] %s220_s27 }
   0x5   : > { %p4534_p2 = pnand %p3100_p0, %p202_p1  ;;  %s4477_s29 = smov [#allocation7]  }
   0x6   : > { %s236_s30 = sshll.u32 %s4477_s29, 4  ;;  %s4404_s11 = scalar_lea.hbm %s5116_s3, 3072  ;;  %s4547_s30 = int_to_ptr.vmem [resolvable:$true] %s236_s30 }
   0x7   : > { %s5123_s28 = scalar_select %p4534_p2, 1, 0 }
   0x8   : > { %p4377_p4 = pneg %p4534_p2  ;;  %p4405_p6 = scmp.ne.s32.totalorder %s5116_s3, %s4404_s11 }
   0x9   : > { %p4411_p10 = scmp.lt.u32.totalorder %s4404_s11, %s5116_s3 }
   0xa   : > { %p4543_p5 = pnand %p5121_p3, %p4377_p4 }
   0xc   : > { %p4406_p7 = pneg %p4543_p5 }
   0xe   : > { %p4407_p8 = pnand %p4406_p7, %p4405_p6 }
  0x10   : > { %p4408_p9 = pneg %p4407_p8 }
  0x12   : > { %p4413_p11 = pnand %p4411_p10, %p4408_p9 }
  0x14   : > { %4416 = shalt.err (!%p4413_p11)
}
  0x15   : > { %s4417_s16 = scalar_lea.vmem %s221_s27, 3072  ;;  %p4425_p1 = scmp.lt.s32.totalorder %s221_s27, %s221_s27 }
  0x16   : > { %p4418_p12 = scmp.ne.s32.totalorder %s221_s27, %s4417_s16  ;;  %p4426_p4 = scmp.lt.s32.totalorder %s4417_s16, %s4417_s16 }
  0x18   : > { %p4420_p13 = pnand %p4418_p12, %p4406_p7  ;;  %p4427_p3 = por %p4426_p4, %p4425_p1 }
  0x1a   : > { %p4421_p0 = pneg %p4420_p13 }
  0x1c   : > { %p4428_p2 = pnand %p4427_p3, %p4421_p0 }
  0x1e   : > { %4431 = shalt.err (!%p4428_p2)
}
  0x1f   : > { %s4478_s17 = smov 128   ;;  %s4479_s18 = smov 8  }
  0x20   : > { %4380 = dma.hbm_to_vmem [thread:$0]  (!%p4543_p5), %s5116_s3, 3072, %s221_s27, [#allocation6], %s4478_s17, %s4478_s17, %s4479_s18  }
  0x21   : > { %s4432_s23 = scalar_lea.hbm %s5118_s5, 6144 }
  0x22   : > { %p4433_p6 = scmp.ne.s32.totalorder %s5118_s5, %s4432_s23  ;;  %p4439_p8 = scmp.lt.u32.totalorder %s4432_s23, %s5118_s5 }
  0x24   : > { %p4435_p2 = pnand %p4433_p6, %p4406_p7 }
  0x26   : > { %p4436_p3 = pneg %p4435_p2 }
  0x28   : > { %p4441_p9 = pnand %p4439_p8, %p4436_p3 }
  0x2a   : > { %4444 = shalt.err (!%p4441_p9)
}
  0x2b   : > { %s4445_s27 = scalar_lea.vmem %s4547_s30, 6144  ;;  %p4453_p13 = scmp.lt.s32.totalorder %s4547_s30, %s4547_s30 }
  0x2c   : > { %p4446_p10 = scmp.ne.s32.totalorder %s4547_s30, %s4445_s27  ;;  %p4454_p0 = scmp.lt.s32.totalorder %s4445_s27, %s4445_s27 }
  0x2e   : > { %p4448_p11 = pnand %p4446_p10, %p4406_p7  ;;  %p4455_p1 = por %p4454_p0, %p4453_p13 }
  0x30   : > { %p4449_p12 = pneg %p4448_p11 }
  0x32   : > { %p4456_p4 = pnand %p4455_p1, %p4449_p12 }
  0x34   : > { %4459 = shalt.err (!%p4456_p4)
}
  0x35   : > { %4383 = dma.hbm_to_vmem [thread:$0]  (!%p4543_p5), %s5118_s5, 6144, %s4547_s30, [#allocation8], %s4478_s17, %s4478_s17, %s4479_s18  }
  0x36   : > { %p5125_p6 = scmp.ne.s32.totalorder %s5123_s28, 0 }
  0x37   : > { %p5126_p2 = scmp.eq.s32.totalorder (!%p5125_p6), %s4530_s25, 0 }
  0x38   : > { %263 = sbr.rel (%p5125_p6) target bundleno = 1785 (0x6f9), region = 48 }
  0x3f   : > { %4465 = dma.done.wait (%p5126_p2), [#allocation6], 3072   ;;  %p5127_p7 = pmov %p5126_p2 }
  0x40   : > { %p5128_p3 = pmov %p5126_p2 }
  0x41   : > { %4467 = vsyncadd (%p5127_p7), [#allocation6], 4294964224 }
  0x42   : > { %4469 = dma.done.wait (%p5128_p3), [#allocation8], 6144   ;;  %p5129_p8 = pmov %p5126_p2 }
  0x43   : > { %v4480_v0 = vmov 0.0|0.0   ;;  %p298_p5 = scmp.lt.s32.totalorder %s4530_s25, 1  ;;  %vm320_vm0 = vcmask 212992   ;;  %vm4481_vm1 = vmmov 0   ;;  %v4482_v1 = vmov 0.0   ;;  %v351_v3 = vld [vmem:[%s5114_s1] sm:$0xff] }
  0x44   : > { %4471 = vsyncadd (%p5129_p8), [#allocation8], 4294961152  ;;  %4038 = vmatprep.subr.bf16.mxu0 %v4480_v0  ;;  %4031 = vmatprep.subr.bf16.mxu1 %v4480_v0  ;;  %321 = vst.msk [vmem:[#allocation2] sm:$0x1] %vm320_vm0, %v4482_v1  ;;  %vm412_vm2 = vcmask 1042432   ;;  %vm4483_vm3 = vmmov 1  }
  0x45   : > { %3549 = vmatprep.mubr.msk.f32.mxu0 %vm4481_vm1, %v4482_v1  ;;  %337 = vst.msk [vmem:[#allocation2 + $0x65] sm:$0x1] %vm320_vm0, %v4482_v1  ;;  %3502 = vmatprep.mubr.msk.f32.mxu1 %vm4481_vm1, %v4482_v1  ;;  %s5133_s25 = smov (!%p298_p5, %s4530_s25), 1  ;;  %vm4620_vm4 = vmpackc.low %vm412_vm2, %vm4483_vm3  ;;  %vm322_vm5 = vcmask 220160   ;;  %v352_v4 = vld [vmem:[%s5114_s1 + $0x8] sm:$0xff]  ;;  %v353_v5 = vld [vmem:[%s5114_s1 + $0x10] sm:$0xff] }
  0x46   : > { %s4368_s28 = smul.u32 104, %s5133_s25  ;;  %v4039_v6 = vpack.c.bf16 %v352_v4, %v351_v3  ;;  %v354_v7 = vld [vmem:[%s5114_s1 + $0x18] sm:$0x7]  ;;  %v3141_v11 = vld [vmem:[%s5114_s1 + $0x40] sm:$0xff]  ;;  %v3142_v12 = vld [vmem:[%s5114_s1 + $0x48] sm:$0xff]  ;;  %vm335_vm6 = vcmask 216064  }
  0x47   : > { %v4042_v13 = vpack.c.bf16 %v354_v7, %v353_v5  ;;  %v4046_v23 = vpack.c.bf16 %v3142_v12, %v3141_v11  ;;  %v3143_v24 = vld [vmem:[%s5114_s1 + $0x50] sm:$0xff]  ;;  %v3144_v25 = vld [vmem:[%s5114_s1 + $0x58] sm:$0x7]  ;;  %v3159_v41 = vld [vmem:[%s5114_s1 + $0x60] sm:$0xff]  ;;  %vm1581_vm8 = vcmask 1040384   ;;  %vm1565_vm9 = vcmask 793600  }
  0x48   : > { %s4636_s19 = scalar_lea.vmem %s5113_s0, %s4368_s28  ;;  %4040 = vmatpush3.bf16.msra.mxu0 %v4039_v6  ;;  %v4049_v29 = vpack.c.bf16 %v3144_v25, %v3143_v24  ;;  %v3160_v42 = vld [vmem:[%s5114_s1 + $0x68] sm:$0xff]  ;;  %v3161_v45 = vld [vmem:[%s5114_s1 + $0x70] sm:$0xff]  ;;  %v3162_v46 = vld [vmem:[%s5114_s1 + $0x78] sm:$0x7]  ;;  %vm1678_vm13 = vcmask 253952   ;;  %vm1680_vm15 = vcmask 261120  }
  0x49   : > { %v307_v8 = vld [vmem:[%s4636_s19] sm:$0xff]  ;;  %v308_v9 = vld [vmem:[%s4636_s19 + $0x8] sm:$0xff]  ;;  %v309_v10 = vld [vmem:[%s4636_s19 + $0x10] sm:$0xff]  ;;  %4041 = vmatprep.subr.bf16.mxu0 %v4480_v0  ;;  %v4053_v44 = vpack.c.bf16 %v3160_v42, %v3159_v41  ;;  %v4056_v48 = vpack.c.bf16 %v3162_v46, %v3161_v45  ;;  %1679 = vst.msk [vmem:[#allocation3] sm:$0x1] %vm1678_vm13, %v4482_v1  ;;  %vm2343_vm0 = vcmask 228352  }
  0x4a   : > { %323 = vst.msk [vmem:[#allocation2 + $0x1] sm:$0xff] %vm322_vm5, %v307_v8  ;;  %324 = vst.msk [vmem:[#allocation2 + $0x9] sm:$0xff] %vm322_vm5, %v308_v9  ;;  %v310_v14 = vld [vmem:[%s4636_s19 + $0x18] sm:$0xff]  ;;  %v311_v15 = vld [vmem:[%s4636_s19 + $0x20] sm:$0xff]  ;;  %vm2348_vm2 = vcmask 1043456   ;;  %s3108_s9 = sshll.u32 %s5133_s25, 2 }
  0x4b   : > { %325 = vst.msk [vmem:[#allocation2 + $0x11] sm:$0xff] %vm322_vm5, %v309_v10  ;;  %v312_v16 = vld [vmem:[%s4636_s19 + $0x28] sm:$0xff]  ;;  %326 = vst.msk [vmem:[#allocation2 + $0x19] sm:$0xff] %vm322_vm5, %v310_v14  ;;  %v313_v17 = vld [vmem:[%s4636_s19 + $0x30] sm:$0xff]  ;;  %s306_s11 = scalar_lea.vmem %s5120_s7, %s3108_s9 }
  0x4c   : > { %327 = vst.msk [vmem:[#allocation2 + $0x21] sm:$0xff] %vm322_vm5, %v311_v15  ;;  %328 = vst.msk [vmem:[#allocation2 + $0x29] sm:$0xff] %vm322_vm5, %v312_v16  ;;  %v314_v18 = vld [vmem:[%s4636_s19 + $0x38] sm:$0xff]  ;;  %v315_v19 = vld [vmem:[%s4636_s19 + $0x40] sm:$0xff]  ;;  %4044 = vmatpush3.bf16.msk.msra.mxu0 %vm4620_vm4, %v4042_v13 }
  0x4d   : > { %329 = vst.msk [vmem:[#allocation2 + $0x31] sm:$0xff] %vm322_vm5, %v313_v17  ;;  %330 = vst.msk [vmem:[#allocation2 + $0x39] sm:$0xff] %vm322_vm5, %v314_v18  ;;  %v316_v20 = vld [vmem:[%s4636_s19 + $0x48] sm:$0xff]  ;;  %v317_v21 = vld [vmem:[%s4636_s19 + $0x50] sm:$0xff]  ;;  %4045 = vmatprep.subr.bf16.mxu0 %v4480_v0 }
  0x4e   : > { %331 = vst.msk [vmem:[#allocation2 + $0x41] sm:$0xff] %vm322_vm5, %v315_v19  ;;  %332 = vst.msk [vmem:[#allocation2 + $0x49] sm:$0xff] %vm322_vm5, %v316_v20  ;;  %v318_v22 = vld [vmem:[%s4636_s19 + $0x58] sm:$0xff]  ;;  %v319_v26 = vld [vmem:[%s4636_s19 + $0x60] sm:$0xf] }
  0x4f   : > { %333 = vst.msk [vmem:[#allocation2 + $0x51] sm:$0xff] %vm322_vm5, %v317_v21  ;;  %334 = vst.msk [vmem:[#allocation2 + $0x59] sm:$0xff] %vm322_vm5, %v318_v22  ;;  %v3109_v53 = vld [vmem:[%s5114_s1 + $0x20] sm:$0xff]  ;;  %v3110_v54 = vld [vmem:[%s5114_s1 + $0x28] sm:$0xff] }
  0x50   : > { %336 = vst.msk [vmem:[#allocation2 + $0x61] sm:$0xf] %vm335_vm6, %v319_v26  ;;  %v4032_v55 = vpack.c.bf16 %v3110_v54, %v3109_v53  ;;  %v3111_v57 = vld [vmem:[%s5114_s1 + $0x30] sm:$0xff]  ;;  %v3112_v58 = vld [vmem:[%s5114_s1 + $0x38] sm:$0x7]  ;;  %v3177_v11 = vld [vmem:[%s5114_s1 + $0x80] sm:$0xff] }
  0x51   : > { %v338_v27 = vld [vmem:[#allocation2] sm:$0xff]  ;;  %v339_v28 = vld [vmem:[#allocation2 + $0x8] sm:$0xff]  ;;  %v4035_v59 = vpack.c.bf16 %v3112_v58, %v3111_v57  ;;  %v3179_v16 = vld [vmem:[%s5114_s1 + $0x90] sm:$0xff]  ;;  %vm2431_vm6 = vcmask 523264  }
  0x52   : > { %3550 = vmatmul.mubr.msk.f32.vlgmr.msra.gmra.mrb[0].mxu0 %vm322_vm5, %v338_v27  ;;  %v340_v30 = vld [vmem:[#allocation2 + $0x10] sm:$0xff]  ;;  %v341_v31 = vld [vmem:[#allocation2 + $0x18] sm:$0xff]  ;;  %v718_v43 = vld [vmem:[#allocation2 + $0x2] sm:$0xff]  ;;  %4033 = vmatpush3.bf16.msra.mxu1 %v4032_v55 }
  0x53   : > { %3552 = vmatprep.mubr.msk.f32.mxu0 %vm4481_vm1, %v4482_v1  ;;  %4047 = vmatpush3.bf16.msra.mxu0 %v4046_v23  ;;  %v342_v32 = vld [vmem:[#allocation2 + $0x20] sm:$0xff]  ;;  %v343_v33 = vld [vmem:[#allocation2 + $0x28] sm:$0xff]  ;;  %v720_v49 = vld [vmem:[#allocation2 + $0x12] sm:$0xff] }
  0x54   : > { %4048 = vmatprep.subr.bf16.mxu0 %v4480_v0  ;;  %v344_v34 = vld [vmem:[#allocation2 + $0x30] sm:$0xff]  ;;  %v345_v35 = vld [vmem:[#allocation2 + $0x38] sm:$0xff]  ;;  %v722_v51 = vld [vmem:[#allocation2 + $0x22] sm:$0xff]  ;;  %4034 = vmatprep.subr.bf16.mxu1 %v4480_v0 }
  0x55   : > { %v346_v36 = vld [vmem:[#allocation2 + $0x40] sm:$0xff]  ;;  %v347_v37 = vld [vmem:[#allocation2 + $0x48] sm:$0xff]  ;;  %v724_v56 = vld [vmem:[#allocation2 + $0x32] sm:$0xff] }
  0x56   : > { %3553 = vmatmul.mubr.msk.f32.gmra.mrb[2].mxu0 %vm322_vm5, %v339_v28  ;;  %v348_v38 = vld [vmem:[#allocation2 + $0x50] sm:$0xff]  ;;  %v349_v39 = vld [vmem:[#allocation2 + $0x58] sm:$0xff]  ;;  %v350_v40 = vld [vmem:[#allocation2 + $0x60] sm:$0x1]  ;;  %4037 = vmatpush3.bf16.msk.msra.mxu1 %vm4620_vm4, %v4035_v59 }
  0x57   : > { %3555 = vmatprep.mubr.msk.f32.mxu0 %vm4481_vm1, %v4482_v1  ;;  %4051 = vmatpush3.bf16.msk.msra.mxu0 %vm4620_vm4, %v4049_v29  ;;  %v719_v47 = vld [vmem:[#allocation2 + $0xa] sm:$0xff]  ;;  %v721_v50 = vld [vmem:[#allocation2 + $0x1a] sm:$0xff]  ;;  %v726_v63 = vld [vmem:[#allocation2 + $0x42] sm:$0xff] }
  0x58   : > { %4052 = vmatprep.subr.bf16.mxu0 %v4480_v0  ;;  %v723_v52 = vld [vmem:[#allocation2 + $0x2a] sm:$0xff]  ;;  %v355_v60 = vld [vmem:[#allocation2 + $0x1] sm:$0xff]  ;;  %4073 = vmatprep.subr.bf16.mxu1 %v4480_v0  ;;  %v358_v5 = vld [vmem:[#allocation2 + $0x19] sm:$0xff] }
  0x59   : > { %v725_v61 = vld [vmem:[#allocation2 + $0x3a] sm:$0xff]  ;;  %3503 = vmatmul.mubr.msk.f32.vlgmr.msra.gmra.mrb[0].mxu1 %vm322_vm5, %v355_v60  ;;  %v356_v62 = vld [vmem:[#allocation2 + $0x9] sm:$0xff]  ;;  %v357_v3 = vld [vmem:[#allocation2 + $0x11] sm:$0xff] }
  0x5a   : > { %3556 = vmatmul.mubr.msk.f32.gmra.mrb[4].mxu0 %vm322_vm5, %v340_v30  ;;  %3505 = vmatprep.mubr.msk.f32.mxu1 %vm4481_vm1, %v4482_v1  ;;  %v727_v4 = vld [vmem:[#allocation2 + $0x4a] sm:$0xff]  ;;  %v728_v6 = vld [vmem:[#allocation2 + $0x52] sm:$0xff]  ;;  %v359_v7 = vld [vmem:[#allocation2 + $0x21] sm:$0xff] }
  0x5b   : > { %3558 = vmatprep.mubr.msk.f32.mxu0 %vm4481_vm1, %v4482_v1  ;;  %v729_v8 = vld [vmem:[#allocation2 + $0x5a] sm:$0xff]  ;;  %v360_v9 = vld [vmem:[#allocation2 + $0x29] sm:$0xff]  ;;  %v730_v10 = vld [vmem:[#allocation2 + $0x62] sm:$0x1] }
  0x5c   : > { %v3178_v12 = vld [vmem:[%s5114_s1 + $0x88] sm:$0xff]  ;;  %v361_v13 = vld [vmem:[#allocation2 + $0x31] sm:$0xff]  ;;  %v362_v18 = vld [vmem:[#allocation2 + $0x39] sm:$0xff] }
  0x5d   : > { %3506 = vmatmul.mubr.msk.f32.gmra.mrb[2].mxu1 %vm322_vm5, %v356_v62  ;;  %v921_v14 = vld [vmem:[#allocation2 + $0x3] sm:$0xff]  ;;  %v4060_v15 = vpack.c.bf16 %v3178_v12, %v3177_v11  ;;  %v3180_v17 = vld [vmem:[%s5114_s1 + $0x98] sm:$0x7]  ;;  %v922_v19 = vld [vmem:[#allocation2 + $0xb] sm:$0xff] }
  0x5e   : > { %3559 = vmatmul.mubr.msk.f32.gmra.mrb[6].mxu0 %vm322_vm5, %v341_v31  ;;  %3508 = vmatprep.mubr.msk.f32.mxu1 %vm4481_vm1, %v4482_v1  ;;  %v4063_v20 = vpack.c.bf16 %v3180_v17, %v3179_v16  ;;  %v363_v21 = vld [vmem:[#allocation2 + $0x41] sm:$0xff]  ;;  %v923_v22 = vld [vmem:[#allocation2 + $0x13] sm:$0xff]  ;;  %v364_v23 = vld [vmem:[#allocation2 + $0x49] sm:$0xff] }
  0x5f   : > { %3561 = vmatprep.mubr.msk.f32.mxu0 %vm4481_vm1, %v4482_v1  ;;  %v924_v24 = vld [vmem:[#allocation2 + $0x1b] sm:$0xff]  ;;  %v365_v25 = vld [vmem:[#allocation2 + $0x51] sm:$0xff]  ;;  %v925_v26 = vld [vmem:[#allocation2 + $0x23] sm:$0xff] }
  0x60   : > { %v366_v27 = vld [vmem:[#allocation2 + $0x59] sm:$0xff]  ;;  %v926_v28 = vld [vmem:[#allocation2 + $0x2b] sm:$0xff]  ;;  %v367_v30 = vld [vmem:[#allocation2 + $0x61] sm:$0x1] }
  0x61   : > { %3509 = vmatmul.mubr.msk.f32.gmra.mrb[4].mxu1 %vm322_vm5, %v357_v3  ;;  %v927_v29 = vld [vmem:[#allocation2 + $0x33] sm:$0xff]  ;;  %v928_v31 = vld [vmem:[#allocation2 + $0x3b] sm:$0xff]  ;;  %v1136_v54 = vld [vmem:[#allocation2 + $0x64] sm:$0x1] }
  0x62   : > { %3562 = vmatmul.mubr.msk.f32.gmra.mrb[8].mxu0 %vm322_vm5, %v342_v32  ;;  %3511 = vmatprep.mubr.msk.f32.mxu1 %vm4481_vm1, %v4482_v1  ;;  %v929_v32 = vld [vmem:[#allocation2 + $0x43] sm:$0xff]  ;;  %v3197_v41 = vld [vmem:[%s5114_s1 + $0xb0] sm:$0xff]  ;;  %v3198_v42 = vld [vmem:[%s5114_s1 + $0xb8] sm:$0x7] }
  0x63   : > { %3564 = vmatprep.mubr.msk.f32.mxu0 %vm4481_vm1, %v4482_v1  ;;  %v1126_v45 = vld [vmem:[#allocation2 + $0x14] sm:$0xff]  ;;  %v1127_v46 = vld [vmem:[#allocation2 + $0x1c] sm:$0xff]  ;;  %v1327_v55 = vld [vmem:[#allocation2 + $0x5] sm:$0xff] }
  0x64   : > { %v1130_v2 = vld [vmem:[#allocation2 + $0x34] sm:$0xff]  ;;  %v1135_v53 = vld [vmem:[#allocation2 + $0x5c] sm:$0xff]  ;;  %v1331_v59 = vld [vmem:[#allocation2 + $0x25] sm:$0xff] }
  0x65   : > { %3512 = vmatmul.mubr.msk.f32.gmra.mrb[6].mxu1 %vm322_vm5, %v358_v5  ;;  %v1329_v57 = vld [vmem:[#allocation2 + $0x15] sm:$0xff]  ;;  %v1330_v58 = vld [vmem:[#allocation2 + $0x1d] sm:$0xff]  ;;  %v1332_v60 = vld [vmem:[#allocation2 + $0x2d] sm:$0xff] }
  0x66   : > { %3565 = vmatmul.mubr.msk.f32.gmra.mrb[10].mxu0 %vm322_vm5, %v343_v33  ;;  %3514 = vmatprep.mubr.msk.f32.mxu1 %vm4481_vm1, %v4482_v1  ;;  %v930_v33 = vld [vmem:[#allocation2 + $0x4b] sm:$0xff]  ;;  %v1334_v62 = vld [vmem:[#allocation2 + $0x3d] sm:$0xff] }
  0x67   : > { %3567 = vmatprep.mubr.msk.f32.mxu0 %vm4481_vm1, %v4482_v1  ;;  %v1336_v3 = vld [vmem:[#allocation2 + $0x4d] sm:$0xff]  ;;  %v1338_v5 = vld [vmem:[#allocation2 + $0x5d] sm:$0xff] }
  0x69   : > { %3515 = vmatmul.mubr.msk.f32.gmra.mrb[8].mxu1 %vm322_vm5, %v359_v7 }
  0x6a   : > { %3568 = vmatmul.mubr.msk.f32.gmra.mrb[12].mxu0 %vm322_vm5, %v344_v34  ;;  %3517 = vmatprep.mubr.msk.f32.mxu1 %vm4481_vm1, %v4482_v1  ;;  %v931_v34 = vld [vmem:[#allocation2 + $0x53] sm:$0xff] }
  0x6b   : > { %3570 = vmatprep.mubr.msk.f32.mxu0 %vm4481_vm1, %v4482_v1 }
  0x6d   : > { %3518 = vmatmul.mubr.msk.f32.gmra.mrb[10].mxu1 %vm322_vm5, %v360_v9 }
  0x6e   : > { %3571 = vmatmul.mubr.msk.f32.gmra.mrb[14].mxu0 %vm322_vm5, %v345_v35  ;;  %3520 = vmatprep.mubr.msk.f32.mxu1 %vm4481_vm1, %v4482_v1  ;;  %v932_v35 = vld [vmem:[#allocation2 + $0x5b] sm:$0xff] }
  0x6f   : > { %3573 = vmatprep.mubr.msk.f32.mxu0 %vm4481_vm1, %v4482_v1 }
  0x71   : > { %3521 = vmatmul.mubr.msk.f32.gmra.mrb[12].mxu1 %vm322_vm5, %v361_v13 }
  0x72   : > { %3574 = vmatmul.mubr.msk.f32.gmra.mrb[16].mxu0 %vm322_vm5, %v346_v36  ;;  %3523 = vmatprep.mubr.msk.f32.mxu1 %vm4481_vm1, %v4482_v1  ;;  %v933_v36 = vld [vmem:[#allocation2 + $0x63] sm:$0x1] }
  0x73   : > { %3576 = vmatprep.mubr.msk.f32.mxu0 %vm4481_vm1, %v4482_v1 }
  0x75   : > { %3524 = vmatmul.mubr.msk.f32.gmra.mrb[14].mxu1 %vm322_vm5, %v362_v18 }
  0x76   : > { %3577 = vmatmul.mubr.msk.f32.gmra.mrb[18].mxu0 %vm322_vm5, %v347_v37  ;;  %3526 = vmatprep.mubr.msk.f32.mxu1 %vm4481_vm1, %v4482_v1  ;;  %v3195_v37 = vld [vmem:[%s5114_s1 + $0xa0] sm:$0xff] }
  0x77   : > { %3579 = vmatprep.mubr.msk.f32.mxu0 %vm4481_vm1, %v4482_v1 }
  0x79   : > { %3527 = vmatmul.mubr.msk.f32.gmra.mrb[16].mxu1 %vm322_vm5, %v363_v21 }
  0x7a   : > { %3580 = vmatmul.mubr.msk.f32.gmra.mrb[20].mxu0 %vm322_vm5, %v348_v38  ;;  %3529 = vmatprep.mubr.msk.f32.mxu1 %vm4481_vm1, %v4482_v1  ;;  %v3196_v38 = vld [vmem:[%s5114_s1 + $0xa8] sm:$0xff] }
  0x7b   : > { %3582 = vmatprep.mubr.msk.f32.mxu0 %vm4481_vm1, %v4482_v1 }
  0x7d   : > { %3530 = vmatmul.mubr.msk.f32.gmra.mrb[18].mxu1 %vm322_vm5, %v364_v23 }
  0x7e   : > { %3583 = vmatmul.mubr.msk.f32.gmra.mrb[22].mxu0 %vm322_vm5, %v349_v39  ;;  %3532 = vmatprep.mubr.msk.f32.mxu1 %vm4481_vm1, %v4482_v1  ;;  %v1124_v39 = vld [vmem:[#allocation2 + $0x4] sm:$0xff] }
  0x7f   : > { %3585 = vmatprep.mubr.msk.f32.mxu0 %vm4481_vm1, %v4482_v1 }
  0x81   : > { %3533 = vmatmul.mubr.msk.f32.gmra.mrb[20].mxu1 %vm322_vm5, %v365_v25 }
  0x82   : > { %3586 = vmatmul.mubr.msk.f32.gmra.mrb[24].mxu0 %vm322_vm5, %v350_v40  ;;  %3535 = vmatprep.mubr.msk.f32.mxu1 %vm4481_vm1, %v4482_v1  ;;  %v4067_v40 = vpack.c.bf16 %v3196_v38, %v3195_v37 }
  0x83   : > { %3596 = vmatprep.mubr.msk.f32.mxu0 %vm4481_vm1, %v4482_v1 }
  0x85   : > { %3536 = vmatmul.mubr.msk.f32.gmra.mrb[22].mxu1 %vm322_vm5, %v366_v27 }
  0x86   : > { %3597 = vmatmul.mubr.msk.f32.vlgmr.msra.gmra.mrb[0].mxu0 %vm322_vm5, %v718_v43  ;;  %3538 = vmatprep.mubr.msk.f32.mxu1 %vm4481_vm1, %v4482_v1  ;;  %v1125_v43 = vld [vmem:[#allocation2 + $0xc] sm:$0xff] }
  0x87   : > { %3599 = vmatprep.mubr.msk.f32.mxu0 %vm4481_vm1, %v4482_v1  ;;  %4054 = vmatpush3.bf16.msra.mxu0 %v4053_v44  ;;  %v4070_v44 = vpack.c.bf16 %v3198_v42, %v3197_v41 }
  0x88   : > { %4055 = vmatprep.subr.bf16.mxu0 %v4480_v0 }
  0x89   : > { %3539 = vmatmul.mubr.msk.f32.gmra.mrb[24].mxu1 %vm322_vm5, %v367_v30 }
  0x8a   : > { %3600 = vmatmul.mubr.msk.f32.gmra.mrb[2].mxu0 %vm322_vm5, %v719_v47  ;;  %3802 = vmatprep.mubr.msk.f32.mxu1 %vm4481_vm1, %v4482_v1  ;;  %v1128_v47 = vld [vmem:[#allocation2 + $0x24] sm:$0xff] }
  0x8b   : > { %3602 = vmatprep.mubr.msk.f32.mxu0 %vm4481_vm1, %v4482_v1  ;;  %4058 = vmatpush3.bf16.msk.msra.mxu0 %vm4620_vm4, %v4056_v48  ;;  %v1129_v48 = vld [vmem:[#allocation2 + $0x2c] sm:$0xff] }
  0x8c   : > { %4059 = vmatprep.subr.bf16.mxu0 %v4480_v0 }
  0x8e   : > { %3603 = vmatmul.mubr.msk.f32.gmra.mrb[4].mxu0 %vm322_vm5, %v720_v49  ;;  %v1131_v49 = vld [vmem:[#allocation2 + $0x3c] sm:$0xff] }
  0x8f   : > { %3605 = vmatprep.mubr.msk.f32.mxu0 %vm4481_vm1, %v4482_v1 }
  0x92   : > { %3606 = vmatmul.mubr.msk.f32.gmra.mrb[6].mxu0 %vm322_vm5, %v721_v50  ;;  %v1132_v50 = vld [vmem:[#allocation2 + $0x44] sm:$0xff] }
  0x93   : > { %3608 = vmatprep.mubr.msk.f32.mxu0 %vm4481_vm1, %v4482_v1 }
  0x96   : > { %3609 = vmatmul.mubr.msk.f32.gmra.mrb[8].mxu0 %vm322_vm5, %v722_v51  ;;  %v1133_v51 = vld [vmem:[#allocation2 + $0x4c] sm:$0xff] }
  0x97   : > { %3611 = vmatprep.mubr.msk.f32.mxu0 %vm4481_vm1, %v4482_v1 }
  0x9a   : > { %3612 = vmatmul.mubr.msk.f32.gmra.mrb[10].mxu0 %vm322_vm5, %v723_v52  ;;  %v1134_v52 = vld [vmem:[#allocation2 + $0x54] sm:$0xff] }
  0x9b   : > { %3614 = vmatprep.mubr.msk.f32.mxu0 %vm4481_vm1, %v4482_v1 }
  0x9e   : > { %3615 = vmatmul.mubr.msk.f32.gmra.mrb[12].mxu0 %vm322_vm5, %v724_v56  ;;  %v1328_v56 = vld [vmem:[#allocation2 + $0xd] sm:$0xff] }
  0x9f   : > { %3617 = vmatprep.mubr.msk.f32.mxu0 %vm4481_vm1, %v4482_v1 }
  0xa2   : > { %3618 = vmatmul.mubr.msk.f32.gmra.mrb[14].mxu0 %vm322_vm5, %v725_v61  ;;  %v1333_v61 = vld [vmem:[#allocation2 + $0x35] sm:$0xff] }
  0xa3   : > { %3620 = vmatprep.mubr.msk.f32.mxu0 %vm4481_vm1, %v4482_v1 }
  0xa6   : > { %3621 = vmatmul.mubr.msk.f32.gmra.mrb[16].mxu0 %vm322_vm5, %v726_v63  ;;  %v1335_v63 = vld [vmem:[#allocation2 + $0x45] sm:$0xff] }
  0xa7   : > { %3623 = vmatprep.mubr.msk.f32.mxu0 %vm4481_vm1, %v4482_v1 }
  0xaa   : > { %3624 = vmatmul.mubr.msk.f32.gmra.mrb[18].mxu0 %vm322_vm5, %v727_v4  ;;  %v1337_v4 = vld [vmem:[#allocation2 + $0x55] sm:$0xff] }
  0xab   : > { %3626 = vmatprep.mubr.msk.f32.mxu0 %vm4481_vm1, %v4482_v1 }
  0xae   : > { %3627 = vmatmul.mubr.msk.f32.gmra.mrb[20].mxu0 %vm322_vm5, %v728_v6  ;;  %v1339_v6 = vld [vmem:[#allocation2 + $0x65] sm:$0x1] }
  0xaf   : > { %3629 = vmatprep.mubr.msk.f32.mxu0 %vm4481_vm1, %v4482_v1 }
  0xb2   : > { %3630 = vmatmul.mubr.msk.f32.gmra.mrb[22].mxu0 %vm322_vm5, %v729_v8 }
  0xb3   : > { %3632 = vmatprep.mubr.msk.f32.mxu0 %vm4481_vm1, %v4482_v1 }
  0xb6   : > { %3633 = vmatmul.mubr.msk.f32.gmra.mrb[24].mxu0 %vm322_vm5, %v730_v10 }
  0xb7   : > { %3643 = vmatprep.mubr.msk.f32.mxu0 %vm4481_vm1, %v4482_v1 }
  0xba   : > { %3644 = vmatmul.mubr.msk.f32.vlgmr.msra.gmra.mrb[0].mxu0 %vm322_vm5, %v921_v14 }
  0xbb   : > { %3646 = vmatprep.mubr.msk.f32.mxu0 %vm4481_vm1, %v4482_v1  ;;  %4061 = vmatpush3.bf16.msra.mxu0 %v4060_v15 }
  0xbc   : > { %4062 = vmatprep.subr.bf16.mxu0 %v4480_v0 }
  0xbe   : > { %3647 = vmatmul.mubr.msk.f32.gmra.mrb[2].mxu0 %vm322_vm5, %v922_v19 }
  0xbf   : > { %3649 = vmatprep.mubr.msk.f32.mxu0 %vm4481_vm1, %v4482_v1  ;;  %4065 = vmatpush3.bf16.msk.msra.mxu0 %vm4620_vm4, %v4063_v20 }
  0xc0   : > { %4066 = vmatprep.subr.bf16.mxu0 %v4480_v0 }
  0xc2   : > { %3650 = vmatmul.mubr.msk.f32.gmra.mrb[4].mxu0 %vm322_vm5, %v923_v22 }
  0xc3   : > { %3652 = vmatprep.mubr.msk.f32.mxu0 %vm4481_vm1, %v4482_v1 }
  0xc6   : > { %3653 = vmatmul.mubr.msk.f32.gmra.mrb[6].mxu0 %vm322_vm5, %v924_v24 }
  0xc7   : > { %3655 = vmatprep.mubr.msk.f32.mxu0 %vm4481_vm1, %v4482_v1 }
  0xca   : > { %3656 = vmatmul.mubr.msk.f32.gmra.mrb[8].mxu0 %vm322_vm5, %v925_v26 }
  0xcb   : > { %3658 = vmatprep.mubr.msk.f32.mxu0 %vm4481_vm1, %v4482_v1 }
  0xce   : > { %3659 = vmatmul.mubr.msk.f32.gmra.mrb[10].mxu0 %vm322_vm5, %v926_v28 }
  0xcf   : > { %3661 = vmatprep.mubr.msk.f32.mxu0 %vm4481_vm1, %v4482_v1 }
  0xd2   : > { %3662 = vmatmul.mubr.msk.f32.gmra.mrb[12].mxu0 %vm322_vm5, %v927_v29 }
  0xd3   : > { %3664 = vmatprep.mubr.msk.f32.mxu0 %vm4481_vm1, %v4482_v1 }
  0xd6   : > { %3665 = vmatmul.mubr.msk.f32.gmra.mrb[14].mxu0 %vm322_vm5, %v928_v31 }
  0xd7   : > { %3667 = vmatprep.mubr.msk.f32.mxu0 %vm4481_vm1, %v4482_v1 }
  0xda   : > { %3668 = vmatmul.mubr.msk.f32.gmra.mrb[16].mxu0 %vm322_vm5, %v929_v32 }
  0xdb   : > { %3670 = vmatprep.mubr.msk.f32.mxu0 %vm4481_vm1, %v4482_v1 }
  0xde   : > { %3671 = vmatmul.mubr.msk.f32.gmra.mrb[18].mxu0 %vm322_vm5, %v930_v33 }
  0xdf   : > { %3673 = vmatprep.mubr.msk.f32.mxu0 %vm4481_vm1, %v4482_v1 }
  0xe2   : > { %3674 = vmatmul.mubr.msk.f32.gmra.mrb[20].mxu0 %vm322_vm5, %v931_v34 }
  0xe3   : > { %3676 = vmatprep.mubr.msk.f32.mxu0 %vm4481_vm1, %v4482_v1 }
  0xe6   : > { %3677 = vmatmul.mubr.msk.f32.gmra.mrb[22].mxu0 %vm322_vm5, %v932_v35 }
  0xe7   : > { %3679 = vmatprep.mubr.msk.f32.mxu0 %vm4481_vm1, %v4482_v1 }
  0xea   : > { %3680 = vmatmul.mubr.msk.f32.gmra.mrb[24].mxu0 %vm322_vm5, %v933_v36 }
  0xeb   : > { %3690 = vmatprep.mubr.msk.f32.mxu0 %vm4481_vm1, %v4482_v1 }
  0xee   : > { %3691 = vmatmul.mubr.msk.f32.vlgmr.msra.gmra.mrb[0].mxu0 %vm322_vm5, %v1124_v39 }
  0xef   : > { %3693 = vmatprep.mubr.msk.f32.mxu0 %vm4481_vm1, %v4482_v1  ;;  %4068 = vmatpush3.bf16.msra.mxu0 %v4067_v40 }
  0xf0   : > { %4069 = vmatprep.subr.bf16.mxu0 %v4480_v0 }
  0xf2   : > { %3694 = vmatmul.mubr.msk.f32.gmra.mrb[2].mxu0 %vm322_vm5, %v1125_v43 }
  0xf3   : > { %3696 = vmatprep.mubr.msk.f32.mxu0 %vm4481_vm1, %v4482_v1  ;;  %4072 = vmatpush3.bf16.msk.msra.mxu0 %vm4620_vm4, %v4070_v44  ;;  %vm4144_vm4 = vmpackc.low %vm2348_vm2, %vm4483_vm3  ;;  %vm2429_vm3 = vcmask 516096  }
  0xf4   : > { %2430 = vst.msk [vmem:[#allocation4] sm:$0x1] %vm2429_vm3, %v4482_v1  ;;  %2435 = vst.msk [vmem:[#allocation4 + $0xb] sm:$0x1] %vm2429_vm3, %v4482_v1 }
  0xf6   : > { %3697 = vmatmul.mubr.msk.f32.gmra.mrb[4].mxu0 %vm322_vm5, %v1126_v45 }
  0xf7   : > { %3699 = vmatprep.mubr.msk.f32.mxu0 %vm4481_vm1, %v4482_v1 }
  0xfa   : > { %3700 = vmatmul.mubr.msk.f32.gmra.mrb[6].mxu0 %vm322_vm5, %v1127_v46 }
  0xfb   : > { %3702 = vmatprep.mubr.msk.f32.mxu0 %vm4481_vm1, %v4482_v1 }
  0xfe   : > { %3703 = vmatmul.mubr.msk.f32.gmra.mrb[8].mxu0 %vm322_vm5, %v1128_v47 }
  0xff   : > { %3705 = vmatprep.mubr.msk.f32.mxu0 %vm4481_vm1, %v4482_v1 }
 0x102   : > { %3706 = vmatmul.mubr.msk.f32.gmra.mrb[10].mxu0 %vm322_vm5, %v1129_v48 }
 0x103   : > { %3708 = vmatprep.mubr.msk.f32.mxu0 %vm4481_vm1, %v4482_v1 }
 0x106   : > { %3709 = vmatmul.mubr.msk.f32.gmra.mrb[12].mxu0 %vm322_vm5, %v1130_v2 }
 0x107   : > { %3711 = vmatprep.mubr.msk.f32.mxu0 %vm4481_vm1, %v4482_v1 }
 0x10a   : > { %3712 = vmatmul.mubr.msk.f32.gmra.mrb[14].mxu0 %vm322_vm5, %v1131_v49 }
 0x10b   : > { %3714 = vmatprep.mubr.msk.f32.mxu0 %vm4481_vm1, %v4482_v1 }
 0x10e   : > { %3715 = vmatmul.mubr.msk.f32.gmra.mrb[16].mxu0 %vm322_vm5, %v1132_v50 }
 0x10f   : > { %3717 = vmatprep.mubr.msk.f32.mxu0 %vm4481_vm1, %v4482_v1 }
 0x112   : > { %3718 = vmatmul.mubr.msk.f32.gmra.mrb[18].mxu0 %vm322_vm5, %v1133_v51 }
 0x113   : > { %3720 = vmatprep.mubr.msk.f32.mxu0 %vm4481_vm1, %v4482_v1 }
 0x116   : > { %3721 = vmatmul.mubr.msk.f32.gmra.mrb[20].mxu0 %vm322_vm5, %v1134_v52 }
 0x117   : > { %3723 = vmatprep.mubr.msk.f32.mxu0 %vm4481_vm1, %v4482_v1 }
 0x11a   : > { %3724 = vmatmul.mubr.msk.f32.gmra.mrb[22].mxu0 %vm322_vm5, %v1135_v53 }
 0x11b   : > { %3726 = vmatprep.mubr.msk.f32.mxu0 %vm4481_vm1, %v4482_v1 }
 0x11e   : > { %3727 = vmatmul.mubr.msk.f32.gmra.mrb[24].mxu0 %vm322_vm5, %v1136_v54 }
 0x11f   : > { %3737 = vmatprep.mubr.msk.f32.mxu0 %vm4481_vm1, %v4482_v1 }
 0x122   : > { %3738 = vmatmul.mubr.msk.f32.vlgmr.msra.gmra.mrb[0].mxu0 %vm322_vm5, %v1327_v55 }
 0x123   : > { %3740 = vmatprep.mubr.msk.f32.mxu0 %vm4481_vm1, %v4482_v1 }
 0x126   : > { %3741 = vmatmul.mubr.msk.f32.gmra.mrb[2].mxu0 %vm322_vm5, %v1328_v56 }
 0x127   : > { %3743 = vmatprep.mubr.msk.f32.mxu0 %vm4481_vm1, %v4482_v1 }
 0x12a   : > { %3744 = vmatmul.mubr.msk.f32.gmra.mrb[4].mxu0 %vm322_vm5, %v1329_v57 }
 0x12b   : > { %3746 = vmatprep.mubr.msk.f32.mxu0 %vm4481_vm1, %v4482_v1 }
 0x12c   : > { %v482_v7 = vpop.f32.mrb[0].mxu1 }
 0x12d   : > { %v3504_v8 = vpop.f32.mrb[1].mxu1 }
 0x12e   : > { %3747 = vmatmul.mubr.msk.f32.gmra.mrb[6].mxu0 %vm322_vm5, %v1330_v58 }
 0x12f   : > { %3749 = vmatprep.mubr.msk.f32.mxu0 %vm4481_vm1, %v4482_v1 }
 0x130   : > { %v487_v9 = vpop.f32.mrb[2].mxu1 }
 0x131   : > { %v3507_v10 = vpop.f32.mrb[3].mxu1 }
 0x132   : > { %3750 = vmatmul.mubr.msk.f32.gmra.mrb[8].mxu0 %vm322_vm5, %v1331_v59 }
 0x133   : > { %3752 = vmatprep.mubr.msk.f32.mxu0 %vm4481_vm1, %v4482_v1 }
 0x134   : > { %v492_v11 = vpop.f32.mrb[4].mxu1 }
 0x135   : > { %v3510_v12 = vpop.f32.mrb[5].mxu1 }
 0x136   : > { %3753 = vmatmul.mubr.msk.f32.gmra.mrb[10].mxu0 %vm322_vm5, %v1332_v60 }
 0x137   : > { %3755 = vmatprep.mubr.msk.f32.mxu0 %vm4481_vm1, %v4482_v1 }
 0x138   : > { %v497_v13 = vpop.f32.mrb[6].mxu1 }
 0x139   : > { %v3513_v14 = vpop.f32.mrb[7].mxu1 }
 0x13a   : > { %3756 = vmatmul.mubr.msk.f32.gmra.mrb[12].mxu0 %vm322_vm5, %v1333_v61 }
 0x13b   : > { %3758 = vmatprep.mubr.msk.f32.mxu0 %vm4481_vm1, %v4482_v1 }
 0x13c   : > { %v502_v15 = vpop.f32.mrb[8].mxu1 }
 0x13d   : > { %v3516_v16 = vpop.f32.mrb[9].mxu1 }
 0x13e   : > { %3759 = vmatmul.mubr.msk.f32.gmra.mrb[14].mxu0 %vm322_vm5, %v1334_v62 }
 0x13f   : > { %3761 = vmatprep.mubr.msk.f32.mxu0 %vm4481_vm1, %v4482_v1 }
 0x140   : > { %v507_v17 = vpop.f32.mrb[10].mxu1 }
 0x141   : > { %v3519_v18 = vpop.f32.mrb[11].mxu1 }
 0x142   : > { %3762 = vmatmul.mubr.msk.f32.gmra.mrb[16].mxu0 %vm322_vm5, %v1335_v63 }
 0x143   : > { %3764 = vmatprep.mubr.msk.f32.mxu0 %vm4481_vm1, %v4482_v1 }
 0x144   : > { %v512_v19 = vpop.f32.mrb[12].mxu1 }
 0x145   : > { %v3522_v20 = vpop.f32.mrb[13].mxu1 }
 0x146   : > { %3765 = vmatmul.mubr.msk.f32.gmra.mrb[18].mxu0 %vm322_vm5, %v1336_v3  ;;  %v1530_v3 = vlaneseq }
 0x147   : > { %3767 = vmatprep.mubr.msk.f32.mxu0 %vm4481_vm1, %v4482_v1 }
 0x148   : > { %v517_v21 = vpop.f32.mrb[14].mxu1  ;;  %v1531_v8 = vshrl.u32 %v1530_v3, 7  ;;  %v1537_v12 = vand.u32 127, %v1530_v3  ;;  %v1902_v3 = vld [vmem:[#allocation5 + $0x48] sm:$0xff] }
 0x149   : > { %v3525_v22 = vpop.f32.mrb[15].mxu1 }
 0x14a   : > { %3768 = vmatmul.mubr.msk.f32.gmra.mrb[20].mxu0 %vm322_vm5, %v1337_v4  ;;  %v1532_v14 = vadd.s32 8, %v1531_v8  ;;  %v1533_v20 = vadd.s32 16, %v1531_v8 }
 0x14b   : > { %3770 = vmatprep.mubr.msk.f32.mxu0 %vm4481_vm1, %v4482_v1 }
 0x14c   : > { %v522_v23 = vpop.f32.mrb[16].mxu1 }
 0x14d   : > { %v3528_v24 = vpop.f32.mrb[17].mxu1 }
 0x14e   : > { %3771 = vmatmul.mubr.msk.f32.gmra.mrb[22].mxu0 %vm322_vm5, %v1338_v5  ;;  %v1540_v24 = vmul.u32 3, %v1533_v20 }
 0x14f   : > { %3773 = vmatprep.mubr.msk.f32.mxu0 %vm4481_vm1, %v4482_v1 }
 0x150   : > { %v527_v25 = vpop.f32.mrb[18].mxu1  ;;  %vm1545_vm11 = vcmp.eq.s32.totalorder %v1537_v12, %v1540_v24  ;;  %v2122_v24 = vld [vmem:[#allocation5 + $0x88] sm:$0xff] }
 0x151   : > { %v3531_v26 = vpop.f32.mrb[19].mxu1 }
 0x152   : > { %3774 = vmatmul.mubr.msk.f32.gmra.mrb[24].mxu0 %vm322_vm5, %v1339_v6  ;;  %vm2433_vm5 = vcmask 517120  }
 0x154   : > { %v532_v27 = vpop.f32.mrb[20].mxu1 }
 0x155   : > { %v3534_v28 = vpop.f32.mrb[21].mxu1 }
 0x156   : > { %v3215_v28 = vsel %vm1545_vm11, 1.0, %v4482_v1 }
 0x158   : > { %v537_v29 = vpop.f32.mrb[22].mxu1 }
 0x159   : > { %v3537_v30 = vpop.f32.mrb[23].mxu1 }
 0x15a   : > { %v1698_v30 = vld [vmem:[#allocation5 + $0x20] sm:$0xff] }
 0x15c   : > { %v4981_v31 = vpop.f32.mrb[24].mxu1 }
 0x15d   : > { %v3540_v32 = vpop.f32.mrb[25].mxu1 }
 0x15e   : > { %v1535_v32 = vadd.s32 32, %v1531_v8 }
 0x1f5   : > { %v1453_v33 = vpop.f32.mrb[0].mxu0 }
 0x1f6   : > { %v4221_v34 = vadd.f32 %v1453_v33, %v482_v7  ;;  %v3739_v35 = vpop.f32.mrb[1].mxu0 }
 0x1f7   : > { %v1700_v35 = vld [vmem:[#allocation5 + $0x30] sm:$0xff] }
 0x1f9   : > { %v1458_v36 = vpop.f32.mrb[2].mxu0 }
 0x1fa   : > { %v4222_v37 = vadd.f32 %v1458_v36, %v487_v9  ;;  %v3742_v38 = vpop.f32.mrb[3].mxu0  ;;  %v1701_v36 = vld [vmem:[#allocation5 + $0x38] sm:$0xff] }
 0x1fb   : > { %v4095_v38 = vpack.c.bf16 %v1701_v36, %v1700_v35  ;;  %v2232_v35 = vld [vmem:[#allocation5 + $0xa8] sm:$0xff] }
 0x1fc   : > { %v4074_v39 = vpack.c.bf16 %v4222_v37, %v4221_v34  ;;  %v1542_v34 = vmul.u32 3, %v1535_v32 }
 0x1fd   : > { %v1463_v40 = vpop.f32.mrb[4].mxu0 }
 0x1fe   : > { %v4223_v41 = vadd.f32 %v1463_v40, %v492_v11  ;;  %v3745_v42 = vpop.f32.mrb[5].mxu0  ;;  %4075 = vmatpush3.bf16.msra.mxu1 %v4074_v39  ;;  %vm1547_vm14 = vcmp.eq.s32.totalorder %v1537_v12, %v1542_v34  ;;  %v1689_v39 = vld [vmem:[#allocation5] sm:$0xff]  ;;  %v1690_v40 = vld [vmem:[#allocation5 + $0x8] sm:$0xff] }
 0x1ff   : > { %4076 = vmatprep.subr.bf16.mxu1 %v4480_v0  ;;  %v3217_v37 = vsel %vm1547_vm14, 1.0, %v4482_v1  ;;  %v3218_v42 = vld [vmem:[%s5115_s2] ss:$0 sm:$0xff] }
 0x200   : > { %v2231_v34 = vld [vmem:[#allocation5 + $0xa0] sm:$0xff] }
 0x201   : > { %v1468_v43 = vpop.f32.mrb[6].mxu0 }
 0x202   : > { %v4224_v44 = vadd.f32 %v1468_v43, %v497_v13  ;;  %v3748_v45 = vpop.f32.mrb[7].mxu0  ;;  %v1538_v13 = vmul.u32 3, %v1531_v8 }
 0x204   : > { %v4077_v46 = vpack.c.bf16 %v4224_v44, %v4223_v41  ;;  %vm1543_vm7 = vcmp.eq.s32.totalorder %v1537_v12, %v1538_v13  ;;  %v4099_v41 = vpack.c.bf16 %v1690_v40, %v1689_v39  ;;  %v2012_v13 = vld [vmem:[#allocation5 + $0x68] sm:$0xff]  ;;  %v2233_v39 = vld [vmem:[#allocation5 + $0xb0] sm:$0xff]  ;;  %v2234_v40 = vld [vmem:[#allocation5 + $0xb8] sm:$0xff] }
 0x205   : > { %v1473_v47 = vpop.f32.mrb[8].mxu0 }
 0x206   : > { %v4225_v48 = vadd.f32 %v1473_v47, %v502_v15  ;;  %v3751_v2 = vpop.f32.mrb[9].mxu0  ;;  %4078 = vmatpush3.bf16.msra.mxu1 %v4077_v46 }
 0x207   : > { %4079 = vmatprep.subr.bf16.mxu1 %v4480_v0 }
 0x209   : > { %v1478_v49 = vpop.f32.mrb[10].mxu0 }
 0x20a   : > { %v4226_v50 = vadd.f32 %v1478_v49, %v507_v17  ;;  %v3754_v51 = vpop.f32.mrb[11].mxu0 }
 0x20c   : > { %v4080_v52 = vpack.c.bf16 %v4226_v50, %v4225_v48 }
 0x20d   : > { %v1483_v53 = vpop.f32.mrb[12].mxu0 }
 0x20e   : > { %v4227_v54 = vadd.f32 %v1483_v53, %v512_v19  ;;  %v3757_v55 = vpop.f32.mrb[13].mxu0  ;;  %4081 = vmatpush3.bf16.msra.mxu1 %v4080_v52  ;;  %v1539_v19 = vmul.u32 3, %v1532_v14 }
 0x20f   : > { %4082 = vmatprep.subr.bf16.mxu1 %v4480_v0 }
 0x210   : > { %vm1544_vm10 = vcmp.eq.s32.totalorder %v1537_v12, %v1539_v19 }
 0x211   : > { %v1488_v56 = vpop.f32.mrb[14].mxu0  ;;  %v4998_v26 = vsel %vm1544_vm10, 1.0, %v4482_v1 }
 0x212   : > { %v4228_v57 = vadd.f32 %v1488_v56, %v517_v21  ;;  %v3760_v58 = vpop.f32.mrb[15].mxu0  ;;  %v1691_v56 = vld [vmem:[#allocation5 + $0x10] sm:$0xff] }
 0x214   : > { %v4083_v59 = vpack.c.bf16 %v4228_v57, %v4227_v54  ;;  %v1692_v57 = vld [vmem:[#allocation5 + $0x18] sm:$0xff] }
 0x215   : > { %v1493_v60 = vpop.f32.mrb[16].mxu0 }
 0x216   : > { %v4229_v61 = vadd.f32 %v1493_v60, %v522_v23  ;;  %v3763_v62 = vpop.f32.mrb[17].mxu0  ;;  %4084 = vmatpush3.bf16.msra.mxu1 %v4083_v59  ;;  %v4991_v23 = vsel %vm1543_vm7, 1.0, %v4482_v1  ;;  %vm2947_vm7 = vcmask 1046528  }
 0x217   : > { %4085 = vmatprep.subr.bf16.mxu1 %v4480_v0 }
 0x219   : > { %v1498_v63 = vpop.f32.mrb[18].mxu0 }
 0x21a   : > { %v4230_v4 = vadd.f32 %v1498_v63, %v527_v25  ;;  %v3766_v5 = vpop.f32.mrb[19].mxu0  ;;  %v1534_v25 = vadd.s32 24, %v1531_v8  ;;  %v1901_v63 = vld [vmem:[#allocation5 + $0x40] sm:$0xff]  ;;  %v1904_v8 = vld [vmem:[#allocation5 + $0x58] sm:$0xff] }
 0x21c   : > { %v4086_v6 = vpack.c.bf16 %v4230_v4, %v4229_v61  ;;  %v4103_v61 = vpack.c.bf16 %v1692_v57, %v1691_v56  ;;  %v4107_v4 = vpack.c.bf16 %v1902_v3, %v1901_v63  ;;  %v2447_v57 = vld [vmem:[#allocation7 + $0x40] sm:$0xff]  ;;  %v2452_v3 = vld [vmem:[#allocation7 + $0x68] sm:$0xff] }
 0x21d   : > { %v1503_v7 = vpop.f32.mrb[20].mxu0  ;;  %v2451_v63 = vld [vmem:[#allocation7 + $0x60] sm:$0xff] }
 0x21e   : > { %v4231_v9 = vadd.f32 %v1503_v7, %v532_v27  ;;  %v3769_v10 = vpop.f32.mrb[21].mxu0  ;;  %4087 = vmatpush3.bf16.msra.mxu1 %v4086_v6  ;;  %v1541_v27 = vmul.u32 3, %v1534_v25  ;;  %v1903_v7 = vld [vmem:[#allocation5 + $0x50] sm:$0xff] }
 0x21f   : > { %4088 = vmatprep.subr.bf16.mxu1 %v4480_v0  ;;  %v4111_v10 = vpack.c.bf16 %v1904_v8, %v1903_v7  ;;  %v3249_v7 = vld [vmem:[%s5117_s4] ss:$0 sm:$0xff] }
 0x220   : > { %vm1546_vm12 = vcmp.eq.s32.totalorder %v1537_v12, %v1541_v27  ;;  %v2011_v12 = vld [vmem:[#allocation5 + $0x60] sm:$0xff] }
 0x221   : > { %v1508_v11 = vpop.f32.mrb[22].mxu0 }
 0x222   : > { %v4232_v15 = vadd.f32 %v1508_v11, %v537_v29  ;;  %v3772_v16 = vpop.f32.mrb[23].mxu0  ;;  %v3216_v29 = vsel %vm1546_vm12, 1.0, %v4482_v1 }
 0x224   : > { %v4089_v17 = vpack.c.bf16 %v4232_v15, %v4231_v9  ;;  %v4115_v15 = vpack.c.bf16 %v2012_v13, %v2011_v12 }
 0x225   : > { %v1513_v18 = vpop.f32.mrb[24].mxu0 }
 0x226   : > { %v4233_v21 = vadd.f32 %v1513_v18, %v4981_v31  ;;  %v3775_v22 = vpop.f32.mrb[25].mxu0  ;;  %4090 = vmatpush3.bf16.msra.mxu1 %v4089_v17  ;;  %v1699_v31 = vld [vmem:[#allocation5 + $0x28] sm:$0xff]  ;;  %v2013_v17 = vld [vmem:[#allocation5 + $0x70] sm:$0xff]  ;;  %v2014_v18 = vld [vmem:[#allocation5 + $0x78] sm:$0xff] }
 0x227   : > { %3800 = vmatprep.subr.mxu1 %v4482_v1  ;;  %v4091_v33 = vpack.c.bf16 %v1699_v31, %v1698_v30  ;;  %v4119_v20 = vpack.c.bf16 %v2014_v18, %v2013_v17  ;;  %v2121_v22 = vld [vmem:[#allocation5 + $0x80] sm:$0xff]  ;;  %v2124_v30 = vld [vmem:[#allocation5 + $0x98] sm:$0xff]  ;;  %v2439_v17 = vld [vmem:[#allocation7 + $0x10] sm:$0xff] }
 0x228   : > { %v4123_v27 = vpack.c.bf16 %v2122_v24, %v2121_v22  ;;  %v2440_v18 = vld [vmem:[#allocation7 + $0x18] sm:$0xff]  ;;  %v2442_v22 = vld [vmem:[#allocation7 + $0x28] sm:$0xff] }
 0x22a   : > { %3801 = vmatpush3.msk.msra.mxu1 %vm1581_vm8, %v4233_v21  ;;  %vm2944_vm8 = vcmask 56320  }
 0x22b   : > { %3803 = vmatmul.mubr.msk.f32.vlgmr.msra.gmra.mrb[26].mxu1 %vm1565_vm9, %v4991_v23  ;;  %4092 = vmatprep.subr.bf16.mxu1 %v4091_v33 }
 0x22c   : > { %3805 = vmatprep.mubr.msk.f32.mxu1 %vm4481_vm1, %v4482_v1  ;;  %4094 = vmatpush3.bf16.msra.mxu1 %v4091_v33 }
 0x22d   : > { %4096 = vmatprep.subr.bf16.mxu1 %v4095_v38 }
 0x22f   : > { %3806 = vmatmul.mubr.msk.f32.gmra.mrb[28].mxu1 %vm1565_vm9, %v4998_v26 }
 0x230   : > { %3808 = vmatprep.mubr.msk.f32.mxu1 %vm4481_vm1, %v4482_v1  ;;  %4098 = vmatpush3.bf16.msra.mxu1 %v4095_v38 }
 0x231   : > { %4100 = vmatprep.subr.bf16.mxu1 %v4099_v41 }
 0x233   : > { %3809 = vmatmul.mubr.msk.f32.gmra.mrb[30].mxu1 %vm1565_vm9, %v3215_v28 }
 0x234   : > { %3811 = vmatprep.mubr.msk.f32.mxu1 %vm4481_vm1, %v4482_v1 }
 0x237   : > { %3812 = vmatmul.mubr.msk.f32.gmra.mrb[32].mxu1 %vm1565_vm9, %v3216_v29  ;;  %v2123_v29 = vld [vmem:[#allocation5 + $0x90] sm:$0xff] }
 0x238   : > { %3814 = vmatprep.mubr.msk.f32.mxu1 %vm4481_vm1, %v4482_v1  ;;  %v4127_v32 = vpack.c.bf16 %v2124_v30, %v2123_v29  ;;  %v2603_v29 = vld [vmem:[#allocation7 + $0x80] sm:$0xff]  ;;  %v2604_v30 = vld [vmem:[#allocation7 + $0x88] sm:$0xff] }
 0x23b   : > { %3815 = vmatmul.mubr.msk.f32.gmra.mrb[34].mxu1 %vm1565_vm9, %v3217_v37  ;;  %v4131_v37 = vpack.c.bf16 %v2232_v35, %v2231_v34 }
 0x2fe   : > { %v1651_v43 = vpop.f32.mrb[26].mxu1 }
 0x2ff   : > { %v1652_v44 = vadd.f32 %v3218_v42, %v1651_v43  ;;  %v3804_v45 = vpop.f32.mrb[27].mxu1 }
 0x301   : > { %v1674_v46 = vmax.f32 %v1652_v44, 0.0 }
 0x302   : > { %v1656_v47 = vpop.f32.mrb[28].mxu1 }
 0x303   : > { %1681 = vst.msk [vmem:[#allocation3 + $0x1] sm:$0xff] %vm1680_vm15, %v1674_v46  ;;  %v1657_v48 = vadd.f32 %v3218_v42, %v1656_v47  ;;  %v3807_v2 = vpop.f32.mrb[29].mxu1 }
 0x305   : > { %v1675_v49 = vmax.f32 %v1657_v48, 0.0 }
 0x306   : > { %v1661_v50 = vpop.f32.mrb[30].mxu1 }
 0x307   : > { %1682 = vst.msk [vmem:[#allocation3 + $0x9] sm:$0xff] %vm1680_vm15, %v1675_v49  ;;  %v1662_v51 = vadd.f32 %v3218_v42, %v1661_v50  ;;  %v3810_v52 = vpop.f32.mrb[31].mxu1 }
 0x309   : > { %v1676_v53 = vmax.f32 %v1662_v51, 0.0 }
 0x30a   : > { %v1666_v54 = vpop.f32.mrb[32].mxu1  ;;  %v1693_v55 = vld [vmem:[#allocation3 + $0x1] sm:$0xff] }
 0x30b   : > { %1683 = vst.msk [vmem:[#allocation3 + $0x11] sm:$0xff] %vm1680_vm15, %v1676_v53  ;;  %v1667_v58 = vadd.f32 %v3218_v42, %v1666_v54  ;;  %v3813_v59 = vpop.f32.mrb[33].mxu1  ;;  %3825 = vmatprep.mubr.msk.f32.mxu1 %vm1680_vm15, %v1693_v55  ;;  %v1685_v9 = vld [vmem:[#allocation3] sm:$0xff]  ;;  %v4135_v42 = vpack.c.bf16 %v2234_v40, %v2233_v39  ;;  %v2609_v39 = vld [vmem:[#allocation7 + $0xb0] sm:$0xff]  ;;  %v2610_v40 = vld [vmem:[#allocation7 + $0xb8] sm:$0xff] }
 0x30d   : > { %v1677_v60 = vmax.f32 %v1667_v58, 0.0  ;;  %v2448_v58 = vld [vmem:[#allocation7 + $0x48] sm:$0xff] }
 0x30e   : > { %v1694_v62 = vld [vmem:[#allocation3 + $0x9] sm:$0xff]  ;;  %v1671_v49 = vpop.f32.mrb[34].mxu1  ;;  %v4150_v59 = vpack.c.bf16 %v2448_v58, %v2447_v57 }
 0x30f   : > { %1684 = vst.msk [vmem:[#allocation3 + $0x19] sm:$0xff] %vm1680_vm15, %v1677_v60  ;;  %3826 = vmatmul.mubr.msk.f32.vlgmr.msra.gmra.mrb[36].mxu1 %vm1680_vm15, %v1694_v62  ;;  %v1686_v11 = vld [vmem:[#allocation3 + $0x8] sm:$0xff]  ;;  %v3816_v50 = vpop.f32.mrb[35].mxu1  ;;  %v2692_v49 = vld [vmem:[#allocation7 + $0xe8] sm:$0xff]  ;;  %v2774_v58 = vld [vmem:[#allocation7 + $0x118] sm:$0xff] }
 0x310   : > { %4102 = vmatpush3.bf16.msra.mxu1 %v4099_v41  ;;  %v1896_v19 = vld [vmem:[#allocation3 + $0x2] sm:$0xff] }
 0x311   : > { %4104 = vmatprep.subr.bf16.mxu1 %v4103_v61  ;;  %v2006_v31 = vld [vmem:[#allocation3 + $0x3] sm:$0xff] }
 0x312   : > { %v1695_v5 = vld [vmem:[#allocation3 + $0x11] sm:$0xff]  ;;  %v2116_v41 = vld [vmem:[#allocation3 + $0x4] sm:$0xff] }
 0x313   : > { %3828 = vmatprep.mubr.msk.f32.mxu1 %vm1680_vm15, %v1695_v5  ;;  %v1687_v14 = vld [vmem:[#allocation3 + $0x10] sm:$0xff]  ;;  %v2226_v46 = vld [vmem:[#allocation3 + $0x5] sm:$0xff]  ;;  %v4156_v5 = vpack.c.bf16 %v2452_v3, %v2451_v63 }
 0x314   : > { %4106 = vmatpush3.bf16.msra.mxu1 %v4103_v61  ;;  %v1897_v21 = vld [vmem:[#allocation3 + $0xa] sm:$0xff] }
 0x315   : > { %4108 = vmatprep.subr.bf16.mxu1 %v4107_v4  ;;  %v2007_v33 = vld [vmem:[#allocation3 + $0xb] sm:$0xff] }
 0x316   : > { %v1696_v6 = vld [vmem:[#allocation3 + $0x19] sm:$0xf]  ;;  %v2117_v43 = vld [vmem:[#allocation3 + $0xc] sm:$0xff]  ;;  %v2229_v2 = vld [vmem:[#allocation3 + $0x1d] sm:$0xf] }
 0x317   : > { %3829 = vmatmul.mubr.msk.f32.gmra.mrb[38].mxu1 %vm1680_vm15, %v1696_v6  ;;  %v1688_v16 = vld [vmem:[#allocation3 + $0x18] sm:$0xf]  ;;  %v2119_v45 = vld [vmem:[#allocation3 + $0x1c] sm:$0xf]  ;;  %v2227_v47 = vld [vmem:[#allocation3 + $0xd] sm:$0xff] }
 0x318   : > { %3839 = vmatprep.mubr.msk.f32.mxu1 %vm1680_vm15, %v1685_v9  ;;  %v1898_v25 = vld [vmem:[#allocation3 + $0x12] sm:$0xff]  ;;  %v1899_v28 = vld [vmem:[#allocation3 + $0x1a] sm:$0xf]  ;;  %v2449_v60 = vld [vmem:[#allocation7 + $0x50] sm:$0xff] }
 0x319   : > { %v2008_v36 = vld [vmem:[#allocation3 + $0x13] sm:$0xff]  ;;  %v2009_v38 = vld [vmem:[#allocation3 + $0x1b] sm:$0xf]  ;;  %v2773_v57 = vld [vmem:[#allocation7 + $0x110] sm:$0xff] }
 0x31a   : > { %v2118_v44 = vld [vmem:[#allocation3 + $0x14] sm:$0xff]  ;;  %v2777_v3 = vld [vmem:[#allocation7 + $0x130] sm:$0xff] }
 0x31b   : > { %3840 = vmatmul.mubr.msk.f32.vlgmr.msra.gmra.mrb[36].mxu1 %vm1680_vm15, %v1686_v11  ;;  %v2228_v48 = vld [vmem:[#allocation3 + $0x15] sm:$0xff] }
 0x31c   : > { %3842 = vmatprep.mubr.msk.f32.mxu1 %vm1680_vm15, %v1687_v14  ;;  %4110 = vmatpush3.bf16.msra.mxu1 %v4107_v4  ;;  %v2450_v61 = vld [vmem:[#allocation7 + $0x58] sm:$0xff]  ;;  %v2453_v4 = vld [vmem:[#allocation7 + $0x70] sm:$0xff]  ;;  %v2437_v14 = vld [vmem:[#allocation7] sm:$0xff] }
 0x31d   : > { %4112 = vmatprep.subr.bf16.mxu1 %v4111_v10  ;;  %v4153_v62 = vpack.c.bf16 %v2450_v61, %v2449_v60  ;;  %v2454_v6 = vld [vmem:[#allocation7 + $0x78] sm:$0xff]  ;;  %v4201_v60 = vpack.c.bf16 %v2774_v58, %v2773_v57  ;;  %v2775_v61 = vld [vmem:[#allocation7 + $0x120] sm:$0xff] }
 0x31f   : > { %3843 = vmatmul.mubr.msk.f32.gmra.mrb[38].mxu1 %vm1680_vm15, %v1688_v16 }
 0x320   : > { %4114 = vmatpush3.bf16.msra.mxu1 %v4111_v10  ;;  %3853 = vmatprep.mubr.msk.f32.mxu1 %vm1680_vm15, %v1896_v19 }
 0x321   : > { %4116 = vmatprep.subr.bf16.mxu1 %v4115_v15 }
 0x323   : > { %3854 = vmatmul.mubr.msk.f32.vlgmr.msra.gmra.mrb[36].mxu1 %vm1680_vm15, %v1897_v21  ;;  %v2441_v21 = vld [vmem:[#allocation7 + $0x20] sm:$0xff] }
 0x324   : > { %3856 = vmatprep.mubr.msk.f32.mxu1 %vm1680_vm15, %v1898_v25  ;;  %4118 = vmatpush3.bf16.msra.mxu1 %v4115_v15  ;;  %v2438_v15 = vld [vmem:[#allocation7 + $0x8] sm:$0xff]  ;;  %v4168_v24 = vpack.c.bf16 %v2442_v22, %v2441_v21  ;;  %v2443_v25 = vld [vmem:[#allocation7 + $0x30] sm:$0xff] }
 0x325   : > { %4120 = vmatprep.subr.bf16.mxu1 %v4119_v20  ;;  %v4162_v16 = vpack.c.bf16 %v2438_v15, %v2437_v14  ;;  %v2861_v15 = vld [vmem:[#allocation7 + $0x170] sm:$0xff] }
 0x327   : > { %3857 = vmatmul.mubr.msk.f32.gmra.mrb[38].mxu1 %vm1680_vm15, %v1899_v28 }
 0x328   : > { %4122 = vmatpush3.bf16.msra.mxu1 %v4119_v20  ;;  %3867 = vmatprep.mubr.msk.f32.mxu1 %vm1680_vm15, %v2006_v31  ;;  %v4165_v20 = vpack.c.bf16 %v2440_v18, %v2439_v17  ;;  %v4174_v31 = vpack.c.bf16 %v2604_v30, %v2603_v29 }
 0x329   : > { %4124 = vmatprep.subr.bf16.mxu1 %v4123_v27 }
 0x32b   : > { %3868 = vmatmul.mubr.msk.f32.vlgmr.msra.gmra.mrb[36].mxu1 %vm1680_vm15, %v2007_v33  ;;  %v2606_v33 = vld [vmem:[#allocation7 + $0x98] sm:$0xff] }
 0x32c   : > { %3870 = vmatprep.mubr.msk.f32.mxu1 %vm1680_vm15, %v2008_v36  ;;  %4126 = vmatpush3.bf16.msra.mxu1 %v4123_v27  ;;  %v2444_v27 = vld [vmem:[#allocation7 + $0x38] sm:$0xff]  ;;  %v2607_v36 = vld [vmem:[#allocation7 + $0xa0] sm:$0xff] }
 0x32d   : > { %4128 = vmatprep.subr.bf16.mxu1 %v4127_v32  ;;  %v4171_v28 = vpack.c.bf16 %v2444_v27, %v2443_v25 }
 0x32f   : > { %3871 = vmatmul.mubr.msk.f32.gmra.mrb[38].mxu1 %vm1680_vm15, %v2009_v38 }
 0x330   : > { %4130 = vmatpush3.bf16.msra.mxu1 %v4127_v32  ;;  %3881 = vmatprep.mubr.msk.f32.mxu1 %vm1680_vm15, %v2116_v41  ;;  %v2605_v32 = vld [vmem:[#allocation7 + $0x90] sm:$0xff]  ;;  %v4183_v41 = vpack.c.bf16 %v2610_v40, %v2609_v39 }
 0x331   : > { %4132 = vmatprep.subr.bf16.mxu1 %v4131_v37  ;;  %v4177_v35 = vpack.c.bf16 %v2606_v33, %v2605_v32 }
 0x333   : > { %3882 = vmatmul.mubr.msk.f32.vlgmr.msra.gmra.mrb[36].mxu1 %vm1680_vm15, %v2117_v43  ;;  %v2688_v43 = vld [vmem:[#allocation7 + $0xc8] sm:$0xff] }
 0x334   : > { %3884 = vmatprep.mubr.msk.f32.mxu1 %vm1680_vm15, %v2118_v44  ;;  %4134 = vmatpush3.bf16.msra.mxu1 %v4131_v37  ;;  %v2608_v37 = vld [vmem:[#allocation7 + $0xa8] sm:$0xff] }
 0x335   : > { %4136 = vmatprep.subr.bf16.mxu1 %v4135_v42  ;;  %v4180_v38 = vpack.c.bf16 %v2608_v37, %v2607_v36 }
 0x337   : > { %3885 = vmatmul.mubr.msk.f32.gmra.mrb[38].mxu1 %vm1680_vm15, %v2119_v45  ;;  %v2689_v45 = vld [vmem:[#allocation7 + $0xd0] sm:$0xff] }
 0x338   : > { %4138 = vmatpush3.bf16.msra.mxu1 %v4135_v42  ;;  %3895 = vmatprep.mubr.msk.f32.mxu1 %vm1680_vm15, %v2226_v46  ;;  %v2687_v42 = vld [vmem:[#allocation7 + $0xc0] sm:$0xff]  ;;  %v2690_v46 = vld [vmem:[#allocation7 + $0xd8] sm:$0xff] }
 0x339   : > { %v4186_v44 = vpack.c.bf16 %v2688_v43, %v2687_v42 }
 0x33b   : > { %3896 = vmatmul.mubr.msk.f32.vlgmr.msra.gmra.mrb[36].mxu1 %vm1680_vm15, %v2227_v47 }
 0x33c   : > { %3898 = vmatprep.mubr.msk.f32.mxu1 %vm1680_vm15, %v2228_v48  ;;  %v4189_v48 = vpack.c.bf16 %v2690_v46, %v2689_v45 }
 0x33f   : > { %3899 = vmatmul.mubr.msk.f32.gmra.mrb[38].mxu1 %vm1680_vm15, %v2229_v2  ;;  %v2691_v2 = vld [vmem:[#allocation7 + $0xe0] sm:$0xff] }
 0x340   : > { %3909 = vmatprep.mubr.msk.f32.mxu1 %vm2343_vm0, %v4991_v23  ;;  %v4192_v50 = vpack.c.bf16 %v2692_v49, %v2691_v2 }
 0x40e   : > { %v3897_v51 = vpop.f32.mrb[36].mxu1 }
 0x40f   : > { %v2313_v52 = vpop.f32.mrb[37].mxu1 }
 0x410   : > { %v4139_v53 = vpack.c.bf16 %v3897_v51, %v2313_v52  ;;  %v2693_v51 = vld [vmem:[#allocation7 + $0xf0] sm:$0xff]  ;;  %v2694_v52 = vld [vmem:[#allocation7 + $0xf8] sm:$0xff] }
 0x412   : > { %v3900_v54 = vpop.f32.mrb[38].mxu1  ;;  %4140 = vmatprep.subr.bf16.mxu1 %v4139_v53 }
 0x413   : > { %v2323_v55 = vpop.f32.mrb[39].mxu1  ;;  %4142 = vmatpush3.bf16.msra.mxu1 %v4139_v53  ;;  %v4195_v53 = vpack.c.bf16 %v2694_v52, %v2693_v51 }
 0x414   : > { %v4143_v56 = vpack.c.bf16 %v3900_v54, %v2323_v55  ;;  %v2771_v54 = vld [vmem:[#allocation7 + $0x100] sm:$0xff]  ;;  %v2772_v55 = vld [vmem:[#allocation7 + $0x108] sm:$0xff] }
 0x416   : > { %4145 = vmatprep.subr.msk.bf16.mxu1 %vm4144_vm4, %v4143_v56 }
 0x417   : > { %4148 = vmatpush3.bf16.msk.msra.mxu1 %vm4144_vm4, %v4143_v56  ;;  %v4198_v56 = vpack.c.bf16 %v2772_v55, %v2771_v54 }
 0x418   : > { %4149 = vmatprep.subr.bf16.mxu1 %v4480_v0 }
 0x41a   : > { %3910 = vmatmul.mubr.msk.f32.vlgmr.msra.gmra.mrb[40].mxu1 %vm2343_vm0, %v4998_v26  ;;  %v4159_v26 = vpack.c.bf16 %v2454_v6, %v2453_v4  ;;  %v2778_v4 = vld [vmem:[#allocation7 + $0x138] sm:$0xff]  ;;  %v2855_v6 = vld [vmem:[#allocation7 + $0x140] sm:$0xff] }
 0x41b   : > { %4151 = vmatpush3.bf16.msra.mxu1 %v4150_v59  ;;  %3928 = vmatprep.mubr.msk.f32.mxu1 %vm4481_vm1, %v4482_v1 }
 0x41c   : > { %4152 = vmatprep.subr.bf16.mxu1 %v4480_v0 }
 0x41f   : > { %4154 = vmatpush3.bf16.msra.mxu1 %v4153_v62  ;;  %v2776_v62 = vld [vmem:[#allocation7 + $0x128] sm:$0xff] }
 0x420   : > { %4155 = vmatprep.subr.bf16.mxu1 %v4480_v0  ;;  %v4204_v63 = vpack.c.bf16 %v2776_v62, %v2775_v61 }
 0x423   : > { %4157 = vmatpush3.bf16.msra.mxu1 %v4156_v5  ;;  %v4207_v5 = vpack.c.bf16 %v2778_v4, %v2777_v3 }
 0x424   : > { %4158 = vmatprep.subr.bf16.mxu1 %v4480_v0 }
 0x427   : > { %4160 = vmatpush3.bf16.msra.mxu1 %v4159_v26  ;;  %v2856_v26 = vld [vmem:[#allocation7 + $0x148] sm:$0xff] }
 0x428   : > { %4161 = vmatprep.subr.bf16.mxu1 %v4480_v0 }
 0x4ed   : > { %v3911_v8 = vpop.f32.mrb[40].mxu1 }
 0x4ee   : > { %v2424_v9 = vadd.f32 %v3911_v8, %v3249_v7  ;;  %v2418_v10 = vpop.f32.mrb[41].mxu1  ;;  %v2857_v8 = vld [vmem:[#allocation7 + $0x150] sm:$0xff] }
 0x4ef   : > { %v2419_v11 = vadd.f32 %v3249_v7, %v2418_v10  ;;  %v4210_v7 = vpack.c.bf16 %v2856_v26, %v2855_v6 }
 0x4f0   : > { %v2428_v12 = vmax.f32 %v2424_v9, 0.0  ;;  %v2858_v9 = vld [vmem:[#allocation7 + $0x158] sm:$0xff] }
 0x4f1   : > { %v2427_v13 = vmax.f32 %v2419_v11, 0.0  ;;  %v4213_v11 = vpack.c.bf16 %v2858_v9, %v2857_v8 }
 0x4f2   : > { %2434 = vst.msk [vmem:[#allocation4 + $0x9] sm:$0x3] %vm2433_vm5, %v2428_v12  ;;  %v2859_v12 = vld [vmem:[#allocation7 + $0x160] sm:$0xff] }
 0x4f3   : > { %2432 = vst.msk [vmem:[#allocation4 + $0x1] sm:$0xff] %vm2431_vm6, %v2427_v13  ;;  %v2860_v13 = vld [vmem:[#allocation7 + $0x168] sm:$0xff] }
 0x4f4   : > { %v4216_v14 = vpack.c.bf16 %v2860_v13, %v2859_v12 }
 0x4fa   : > { %v2445_v19 = vld [vmem:[#allocation4 + $0x1] sm:$0x7f] }
 0x4fb   : > { %3929 = vmatmul.mubr.msk.f32.vlgmr.msra.gmra.mrb[42].mxu1 %vm2431_vm6, %v2445_v19  ;;  %v2436_v34 = vld [vmem:[#allocation4] sm:$0x7f] }
 0x4fc   : > { %4163 = vmatpush3.bf16.msra.mxu1 %v4162_v16  ;;  %3947 = vmatprep.mubr.msk.f32.mxu1 %vm4481_vm1, %v4482_v1  ;;  %v2601_v47 = vld [vmem:[#allocation4 + $0x2] sm:$0x7f] }
 0x4fd   : > { %4164 = vmatprep.subr.bf16.mxu1 %v4480_v0  ;;  %v2685_v59 = vld [vmem:[#allocation4 + $0x3] sm:$0x7f] }
 0x4fe   : > { %v2769_v10 = vld [vmem:[#allocation4 + $0x4] sm:$0x7f] }
 0x4ff   : > { %v2862_v16 = vld [vmem:[#allocation7 + $0x178] sm:$0xff] }
 0x500   : > { %4166 = vmatpush3.bf16.msra.mxu1 %v4165_v20  ;;  %v4219_v17 = vpack.c.bf16 %v2862_v16, %v2861_v15  ;;  %v2853_v18 = vld [vmem:[#allocation4 + $0x5] sm:$0x7f] }
 0x501   : > { %4167 = vmatprep.subr.bf16.mxu1 %v4480_v0 }
 0x504   : > { %4169 = vmatpush3.bf16.msra.mxu1 %v4168_v24 }
 0x505   : > { %4170 = vmatprep.subr.bf16.mxu1 %v4480_v0 }
 0x508   : > { %4172 = vmatpush3.bf16.msra.mxu1 %v4171_v28 }
 0x509   : > { %4173 = vmatprep.subr.bf16.mxu1 %v4480_v0 }
 0x50b   : > { %3948 = vmatmul.mubr.msk.f32.vlgmr.msra.gmra.mrb[42].mxu1 %vm2431_vm6, %v2436_v34 }
 0x50c   : > { %4175 = vmatpush3.bf16.msra.mxu1 %v4174_v31  ;;  %3966 = vmatprep.mubr.msk.f32.mxu1 %vm4481_vm1, %v4482_v1 }
 0x50d   : > { %4176 = vmatprep.subr.bf16.mxu1 %v4480_v0 }
 0x510   : > { %4178 = vmatpush3.bf16.msra.mxu1 %v4177_v35 }
 0x511   : > { %4179 = vmatprep.subr.bf16.mxu1 %v4480_v0 }
 0x514   : > { %4181 = vmatpush3.bf16.msra.mxu1 %v4180_v38 }
 0x515   : > { %4182 = vmatprep.subr.bf16.mxu1 %v4480_v0 }
 0x518   : > { %4184 = vmatpush3.bf16.msra.mxu1 %v4183_v41 }
 0x519   : > { %4185 = vmatprep.subr.bf16.mxu1 %v4480_v0 }
 0x51b   : > { %3967 = vmatmul.mubr.msk.f32.vlgmr.msra.gmra.mrb[42].mxu1 %vm2431_vm6, %v2601_v47 }
 0x51c   : > { %4187 = vmatpush3.bf16.msra.mxu1 %v4186_v44  ;;  %3985 = vmatprep.mubr.msk.f32.mxu1 %vm4481_vm1, %v4482_v1 }
 0x51d   : > { %4188 = vmatprep.subr.bf16.mxu1 %v4480_v0 }
 0x520   : > { %4190 = vmatpush3.bf16.msra.mxu1 %v4189_v48 }
 0x521   : > { %4191 = vmatprep.subr.bf16.mxu1 %v4480_v0 }
 0x524   : > { %4193 = vmatpush3.bf16.msra.mxu1 %v4192_v50 }
 0x525   : > { %4194 = vmatprep.subr.bf16.mxu1 %v4480_v0 }
 0x528   : > { %4196 = vmatpush3.bf16.msra.mxu1 %v4195_v53 }
 0x529   : > { %4197 = vmatprep.subr.bf16.mxu1 %v4480_v0 }
 0x52b   : > { %3986 = vmatmul.mubr.msk.f32.vlgmr.msra.gmra.mrb[42].mxu1 %vm2431_vm6, %v2685_v59 }
 0x52c   : > { %4199 = vmatpush3.bf16.msra.mxu1 %v4198_v56  ;;  %4004 = vmatprep.mubr.msk.f32.mxu1 %vm4481_vm1, %v4482_v1 }
 0x52d   : > { %4200 = vmatprep.subr.bf16.mxu1 %v4480_v0 }
 0x530   : > { %4202 = vmatpush3.bf16.msra.mxu1 %v4201_v60 }
 0x531   : > { %4203 = vmatprep.subr.bf16.mxu1 %v4480_v0 }
 0x534   : > { %4205 = vmatpush3.bf16.msra.mxu1 %v4204_v63 }
 0x535   : > { %4206 = vmatprep.subr.bf16.mxu1 %v4480_v0 }
 0x538   : > { %4208 = vmatpush3.bf16.msra.mxu1 %v4207_v5 }
 0x539   : > { %4209 = vmatprep.subr.bf16.mxu1 %v4480_v0 }
 0x53b   : > { %4005 = vmatmul.mubr.msk.f32.vlgmr.msra.gmra.mrb[42].mxu1 %vm2431_vm6, %v2769_v10 }
 0x53c   : > { %4211 = vmatpush3.bf16.msra.mxu1 %v4210_v7  ;;  %4023 = vmatprep.mubr.msk.f32.mxu1 %vm4481_vm1, %v4482_v1 }
 0x53d   : > { %4212 = vmatprep.subr.bf16.mxu1 %v4480_v0 }
 0x540   : > { %4214 = vmatpush3.bf16.msra.mxu1 %v4213_v11 }
 0x541   : > { %4215 = vmatprep.subr.bf16.mxu1 %v4480_v0 }
 0x544   : > { %4217 = vmatpush3.bf16.msra.mxu1 %v4216_v14 }
 0x545   : > { %4218 = vmatprep.subr.bf16.mxu1 %v4480_v0  ;;  %v3259_v0 = vld [vmem:[%s5119_s6] ss:$0 sm:$0xff] }
 0x548   : > { %4220 = vmatpush3.bf16.msra.mxu1 %v4219_v17 }
 0x549   : > { %4026 = vmatprep.subr.mxu1 %v4482_v1 }
 0x54b   : > { %4024 = vmatmul.mubr.msk.f32.vlgmr.msra.gmra.mrb[42].mxu1 %vm2431_vm6, %v2853_v18 }
 0x54c   : > { %4028 = vmatprep.mubr.msk.f32.mxu1 %vm4481_vm1, %v4482_v1 }
 0x61e   : > { %v2932_v19 = vpop.f32.mrb[42].mxu1 }
 0x61f   : > { %v4025_v20 = vpop.f32.mrb[43].mxu1  ;;  %4027 = vmatpush3.msk.msra.mxu1 %vm2947_vm7, %v2932_v19 }
 0x620   : > { %4029 = vmatmul.mubr.msk.f32.vlgmr.msra.gmra.mrb[44].mxu1 %vm2944_vm8, %v4991_v23 }
 0x6f3   : > { %v3017_v21 = vpop.f32.mrb[44].mxu1 }
 0x6f4   : > { %v3018_v22 = vadd.f32 %v3259_v0, %v3017_v21  ;;  %v4030_v24 = vpop.f32.mrb[45].mxu1 }
 0x6f6   : > { %v3021_v1 = vmax.f32 %v3018_v22, 0.0 }
 0x6f8   : > { %3022 = vst [vmem:[%s306_s11] sm:$0x7] %v3021_v1 }
 0x6f9 PF: > { %s19_s24 = sadd.s32 1, %s4474_s24  }
 0x6fa   : > { %p16_p9 = scmp.ge.s32.totalorder %s19_s24, 4  }
 0x6fc   :  { %18 = sbr.rel (!%p16_p9) target bundleno = 2 (0x2), region = 102 }
 0x703   :  { %3042 = vsyncpa [#allocation6], 1 }
 0x704   :  { %3044 = vsyncpa [#allocation6 + $0x1], 1 }
 0x705   :  { %3045 = vsyncpa [#allocation8], 1 }

</bundles_post_ra>
